<compile_context>
chip_gen: v7x
topology: tpu7x:2x2x1
jax: 0.10.0
libtpu: 0.0.40
codegen_flags: <defaults>
</compile_context>

<pallas_src>
import jax
import jax.numpy as jnp
from jax import lax
from jax.experimental import pallas as pl
from jax.experimental.pallas import tpu as pltpu

LOG_SIG_MAX = 2.0
LOG_SIG_MIN = -20.0

IN_DIM = 38
HID = 512
OUT_DIM = 2
HEAD_PAD = 128        # fused mean|log_std head, zero-padded to a full lane width

DEFAULT_TB = 512      # batch tile (amortizes per-grid-step overhead on v6e)


def _cdiv(a, m):
    return -(-a // m)


def _round_up(x, m):
    return _cdiv(x, m) * m


def _choose_tiling(batch, tb):
    """Pick a batch tile (multiple of 16) and the padded batch size."""
    num_tiles = max(1, _cdiv(batch, tb))
    if num_tiles == 1 and batch >= 256:
        num_tiles = 2                       # feed both TensorCores on v7x
    tb_eff = _round_up(_cdiv(batch, num_tiles), 16)
    padded_batch = _round_up(batch, tb_eff)
    return tb_eff, padded_batch


def _policy_kernel(s_ref,
                   w1_ref, b1_ref,
                   w2_ref, b2_ref,
                   w3_ref, b3_ref,
                   wh_ref, bh_ref,
                   out_ref):
    # s_ref: f32 [TB, 38]; weights bf16; biases f32; f32 MXU accumulation.
    s = s_ref[...].astype(jnp.bfloat16)

    h1 = jnp.maximum(
        jnp.dot(s, w1_ref[...], preferred_element_type=jnp.float32) + b1_ref[...],
        0.0).astype(jnp.bfloat16)

    h2 = jnp.maximum(
        jnp.dot(h1, w2_ref[...], preferred_element_type=jnp.float32) + b2_ref[...],
        0.0).astype(jnp.bfloat16)

    h3 = jnp.maximum(
        jnp.dot(h2, w3_ref[...], preferred_element_type=jnp.float32) + b3_ref[...],
        0.0).astype(jnp.bfloat16)

    # Fused, lane-dense head: cols [0:2] = mean, [2:4] = log_std, [4:128] = pad.
    heads = jnp.dot(h3, wh_ref[...], preferred_element_type=jnp.float32) + bh_ref[...]
    col = lax.broadcasted_iota(jnp.int32, heads.shape, 1)
    is_log_std = jnp.logical_and(col >= OUT_DIM, col < 2 * OUT_DIM)
    clamped = jnp.clip(heads, LOG_SIG_MIN, LOG_SIG_MAX)
    out_ref[...] = jnp.where(is_log_std, clamped, heads).astype(out_ref.dtype)


def prepare_params(p):
    """Host-side prep: fuse + zero-pad heads to 128 cols, cast weights to bf16."""
    wh = jnp.zeros((HID, HEAD_PAD), jnp.bfloat16)
    wh = wh.at[:, :OUT_DIM].set(p["wm"].astype(jnp.bfloat16))
    wh = wh.at[:, OUT_DIM:2 * OUT_DIM].set(p["wl"].astype(jnp.bfloat16))
    bh = jnp.zeros((1, HEAD_PAD), jnp.float32)
    bh = bh.at[:, :OUT_DIM].set(p["bm"])
    bh = bh.at[:, OUT_DIM:2 * OUT_DIM].set(p["bl"])
    return dict(
        w1=p["w1"].astype(jnp.bfloat16), b1=p["b1"],
        w2=p["w2"].astype(jnp.bfloat16), b2=p["b2"],
        w3=p["w3"].astype(jnp.bfloat16), b3=p["b3"],
        wh=wh, bh=bh,
    )


def policy_net_gaussian_forward(s, prep, *, tb=DEFAULT_TB):
    """PolicyNetGaussian forward in one batch-tiled Pallas kernel.

    Args:
      s: [batch, 38] float32 observations.
      prep: output of prepare_params().
    Returns:
      (mean, log_std_clamped): each [batch, 2] float32.
    """
    batch = s.shape[0]
    tb_eff, padded_batch = _choose_tiling(batch, tb)
    grid = (padded_batch // tb_eff,)

    # Only the batch (row) dim is padded; feature dim stays 38, dtype stays f32.
    if padded_batch != batch:
        s_in = jnp.pad(s, ((0, padded_batch - batch), (0, 0)))
    else:
        s_in = s

    const = lambda i: (0, 0)          # weights/biases: VMEM-resident, one DMA
    in_specs = [
        pl.BlockSpec((tb_eff, IN_DIM), lambda i: (i, 0)),
        pl.BlockSpec((IN_DIM, HID), const),
        pl.BlockSpec((1, HID), const),
        pl.BlockSpec((HID, HID), const),
        pl.BlockSpec((1, HID), const),
        pl.BlockSpec((HID, HID), const),
        pl.BlockSpec((1, HID), const),
        pl.BlockSpec((HID, HEAD_PAD), const),
        pl.BlockSpec((1, HEAD_PAD), const),
    ]
    out_spec = pl.BlockSpec((tb_eff, HEAD_PAD), lambda i: (i, 0))

    flops = 2 * padded_batch * (IN_DIM * HID + 2 * HID * HID + HID * HEAD_PAD)
    bytes_accessed = (
        padded_batch * IN_DIM * 4                                   # s (f32)
        + (IN_DIM * HID + 2 * HID * HID + HID * HEAD_PAD) * 2       # bf16 weights
        + (3 * HID + HEAD_PAD) * 4                                  # f32 biases
        + padded_batch * HEAD_PAD * 4                               # f32 output
    )

    out = pl.pallas_call(
        _policy_kernel,
        out_shape=jax.ShapeDtypeStruct((padded_batch, HEAD_PAD), jnp.float32),
        grid=grid,
        in_specs=in_specs,
        out_specs=out_spec,
        compiler_params=pltpu.CompilerParams(
            dimension_semantics=("parallel",)),
        cost_estimate=pl.CostEstimate(
            flops=int(flops), transcendentals=0,
            bytes_accessed=int(bytes_accessed)),
    )(s_in,
      prep["w1"], prep["b1"],
      prep["w2"], prep["b2"],
      prep["w3"], prep["b3"],
      prep["wh"], prep["bh"])

    mean = out[:batch, :OUT_DIM]
    log_std = out[:batch, OUT_DIM:2 * OUT_DIM]
    return mean, log_std


def init_params(key):
    """PyTorch-style (uniform +/- 1/sqrt(fan_in)) init.

    Weights stored [in_features, out_features] (= nn.Linear W.T) so the kernel
    computes x @ W directly; biases stored [1, out_features].
    """
    def linear(key, fan_in, fan_out):
        kw, kb = jax.random.split(key)
        bound = 1.0 / jnp.sqrt(jnp.float32(fan_in))
        w = jax.random.uniform(kw, (fan_in, fan_out), jnp.float32, -bound, bound)
        b = jax.random.uniform(kb, (1, fan_out), jnp.float32, -bound, bound)
        return w, b

    k1, k2, k3, k4, k5 = jax.random.split(key, 5)
    w1, b1 = linear(k1, IN_DIM, HID)
    w2, b2 = linear(k2, HID, HID)
    w3, b3 = linear(k3, HID, HID)
    wm, bm = linear(k4, HID, OUT_DIM)
    wl, bl = linear(k5, HID, OUT_DIM)
    return dict(w1=w1, b1=b1, w2=w2, b2=b2, w3=w3, b3=b3,
                wm=wm, bm=bm, wl=wl, bl=bl)


def reference_forward(s, p):
    """Pure-JAX reference mirroring the kernel's bf16-weight / f32-accum math."""
    def lin(x, w, b):
        return jnp.dot(x.astype(jnp.bfloat16), w.astype(jnp.bfloat16),
                       preferred_element_type=jnp.float32) + b
    h1 = jnp.maximum(lin(s, p["w1"], p["b1"]), 0.0)
    h2 = jnp.maximum(lin(h1, p["w2"], p["b2"]), 0.0)
    h3 = jnp.maximum(lin(h2, p["w3"], p["b3"]), 0.0)
    mean = lin(h3, p["wm"], p["bm"])
    log_std = jnp.clip(lin(h3, p["wl"], p["bl"]), LOG_SIG_MIN, LOG_SIG_MAX)
    return mean, log_std


if __name__ == "__main__":
    key = jax.random.PRNGKey(0)
    k_params, k_input = jax.random.split(key)

    params = init_params(k_params)
    prep = prepare_params(params)

    # Small "acting" batch.
    batch = 2
    s = jax.random.normal(k_input, (batch, IN_DIM), jnp.float32)

    fwd = jax.jit(policy_net_gaussian_forward)
    mean, log_std = fwd(s, prep)
    jax.block_until_ready((mean, log_std))

    ref_mean, ref_log_std = reference_forward(s, params)
    assert mean.shape == (batch, OUT_DIM) and log_std.shape == (batch, OUT_DIM)
    assert jnp.allclose(mean, ref_mean, atol=2e-3, rtol=2e-3)
    assert jnp.allclose(log_std, ref_log_std, atol=2e-3, rtol=2e-3)
    assert bool(jnp.all(log_std <= LOG_SIG_MAX)) and bool(jnp.all(log_std >= LOG_SIG_MIN))

    # Larger, non-tile-aligned "training" batch to exercise the multi-tile grid.
    big = 300
    s_big = jax.random.normal(jax.random.PRNGKey(1), (big, IN_DIM), jnp.float32)
    m_big, l_big = fwd(s_big, prep)
    jax.block_until_ready((m_big, l_big))
    rm_big, rl_big = reference_forward(s_big, params)
    assert m_big.shape == (big, OUT_DIM) and l_big.shape == (big, OUT_DIM)
    assert jnp.allclose(m_big, rm_big, atol=2e-3, rtol=2e-3)
    assert jnp.allclose(l_big, rl_big, atol=2e-3, rtol=2e-3)

    # TODO(synk): sample() (Normal rsample + tanh squash + log_prob) is not part
    # of forward(); left to plain JAX if needed.
    print("KERNEL_OK")
</pallas_src>

<mosaic_0001>
module attributes {stable_mosaic.version = 11 : i64} {
  func.func @_policy_kernel(%arg0: i32, %arg1: memref<16x38xf32, #tpu.memory_space<vmem>>, %arg2: memref<38x512xbf16, #tpu.memory_space<vmem>>, %arg3: memref<1x512xf32, #tpu.memory_space<vmem>>, %arg4: memref<512x512xbf16, #tpu.memory_space<vmem>>, %arg5: memref<1x512xf32, #tpu.memory_space<vmem>>, %arg6: memref<512x512xbf16, #tpu.memory_space<vmem>>, %arg7: memref<1x512xf32, #tpu.memory_space<vmem>>, %arg8: memref<512x128xbf16, #tpu.memory_space<vmem>>, %arg9: memref<1x128xf32, #tpu.memory_space<vmem>>, %arg10: memref<16x128xf32, #tpu.memory_space<vmem>>) attributes {dimension_semantics = [#tpu.dimension_semantics<parallel>], iteration_bounds = array<i64: 1>, scalar_prefetch = 0 : i64, scratch_operands = 0 : i64, tpu.core_type = #tpu.core_type<tc>, window_params = [{transform_indices = @transform_0, window_bounds = array<i64: 16, 38>}, {pipeline_mode = #tpu.pipeline_mode<synchronous>, transform_indices = @transform_1, window_bounds = array<i64: 38, 512>}, {pipeline_mode = #tpu.pipeline_mode<synchronous>, transform_indices = @transform_2, window_bounds = array<i64: 1, 512>}, {pipeline_mode = #tpu.pipeline_mode<synchronous>, transform_indices = @transform_3, window_bounds = array<i64: 512, 512>}, {pipeline_mode = #tpu.pipeline_mode<synchronous>, transform_indices = @transform_4, window_bounds = array<i64: 1, 512>}, {pipeline_mode = #tpu.pipeline_mode<synchronous>, transform_indices = @transform_5, window_bounds = array<i64: 512, 512>}, {pipeline_mode = #tpu.pipeline_mode<synchronous>, transform_indices = @transform_6, window_bounds = array<i64: 1, 512>}, {pipeline_mode = #tpu.pipeline_mode<synchronous>, transform_indices = @transform_7, window_bounds = array<i64: 512, 128>}, {pipeline_mode = #tpu.pipeline_mode<synchronous>, transform_indices = @transform_8, window_bounds = array<i64: 1, 128>}, {transform_indices = @transform_9, window_bounds = array<i64: 16, 128>}]} {
    %c0 = arith.constant 0 : index
    %c0_0 = arith.constant 0 : index
    %0 = vector.load %arg1[%c0, %c0_0] : memref<16x38xf32, #tpu.memory_space<vmem>>, vector<16x38xf32>
    %1 = arith.truncf %0 : vector<16x38xf32> to vector<16x38xbf16>
    %c0_1 = arith.constant 0 : index
    %c0_2 = arith.constant 0 : index
    %2 = vector.load %arg2[%c0_1, %c0_2] : memref<38x512xbf16, #tpu.memory_space<vmem>>, vector<38x512xbf16>
    %cst = arith.constant dense<0.000000e+00> : vector<16x512xf32>
    %3 = tpu.matmul %1, %2, %cst {dimension_numbers = #tpu.dot_dimension_numbers<[1], [0], [0], [1], [0, 0, 1, 1], [], []>} : vector<16x38xbf16>, vector<38x512xbf16>, vector<16x512xf32> -> vector<16x512xf32>
    %c0_3 = arith.constant 0 : index
    %c0_4 = arith.constant 0 : index
    %4 = vector.load %arg3[%c0_3, %c0_4] : memref<1x512xf32, #tpu.memory_space<vmem>>, vector<1x512xf32>
    %5 = vector.broadcast %4 : vector<1x512xf32> to vector<16x512xf32>
    %6 = arith.addf %3, %5 : vector<16x512xf32>
    %cst_5 = arith.constant 0.000000e+00 : f32
    %7 = vector.broadcast %cst_5 : f32 to vector<16x512xf32>
    %8 = arith.maximumf %6, %7 : vector<16x512xf32>
    %9 = arith.truncf %8 : vector<16x512xf32> to vector<16x512xbf16>
    %c0_6 = arith.constant 0 : index
    %c0_7 = arith.constant 0 : index
    %10 = vector.load %arg4[%c0_6, %c0_7] : memref<512x512xbf16, #tpu.memory_space<vmem>>, vector<512x512xbf16>
    %cst_8 = arith.constant dense<0.000000e+00> : vector<16x512xf32>
    %11 = tpu.matmul %9, %10, %cst_8 {dimension_numbers = #tpu.dot_dimension_numbers<[1], [0], [0], [1], [0, 0, 1, 1], [], []>} : vector<16x512xbf16>, vector<512x512xbf16>, vector<16x512xf32> -> vector<16x512xf32>
    %c0_9 = arith.constant 0 : index
    %c0_10 = arith.constant 0 : index
    %12 = vector.load %arg5[%c0_9, %c0_10] : memref<1x512xf32, #tpu.memory_space<vmem>>, vector<1x512xf32>
    %13 = vector.broadcast %12 : vector<1x512xf32> to vector<16x512xf32>
    %14 = arith.addf %11, %13 : vector<16x512xf32>
    %cst_11 = arith.constant 0.000000e+00 : f32
    %15 = vector.broadcast %cst_11 : f32 to vector<16x512xf32>
    %16 = arith.maximumf %14, %15 : vector<16x512xf32>
    %17 = arith.truncf %16 : vector<16x512xf32> to vector<16x512xbf16>
    %c0_12 = arith.constant 0 : index
    %c0_13 = arith.constant 0 : index
    %18 = vector.load %arg6[%c0_12, %c0_13] : memref<512x512xbf16, #tpu.memory_space<vmem>>, vector<512x512xbf16>
    %cst_14 = arith.constant dense<0.000000e+00> : vector<16x512xf32>
    %19 = tpu.matmul %17, %18, %cst_14 {dimension_numbers = #tpu.dot_dimension_numbers<[1], [0], [0], [1], [0, 0, 1, 1], [], []>} : vector<16x512xbf16>, vector<512x512xbf16>, vector<16x512xf32> -> vector<16x512xf32>
    %c0_15 = arith.constant 0 : index
    %c0_16 = arith.constant 0 : index
    %20 = vector.load %arg7[%c0_15, %c0_16] : memref<1x512xf32, #tpu.memory_space<vmem>>, vector<1x512xf32>
    %21 = vector.broadcast %20 : vector<1x512xf32> to vector<16x512xf32>
    %22 = arith.addf %19, %21 : vector<16x512xf32>
    %cst_17 = arith.constant 0.000000e+00 : f32
    %23 = vector.broadcast %cst_17 : f32 to vector<16x512xf32>
    %24 = arith.maximumf %22, %23 : vector<16x512xf32>
    %25 = arith.truncf %24 : vector<16x512xf32> to vector<16x512xbf16>
    %c0_18 = arith.constant 0 : index
    %c0_19 = arith.constant 0 : index
    %26 = vector.load %arg8[%c0_18, %c0_19] : memref<512x128xbf16, #tpu.memory_space<vmem>>, vector<512x128xbf16>
    %cst_20 = arith.constant dense<0.000000e+00> : vector<16x128xf32>
    %27 = tpu.matmul %25, %26, %cst_20 {dimension_numbers = #tpu.dot_dimension_numbers<[1], [0], [0], [1], [0, 0, 1, 1], [], []>} : vector<16x512xbf16>, vector<512x128xbf16>, vector<16x128xf32> -> vector<16x128xf32>
    %c0_21 = arith.constant 0 : index
    %c0_22 = arith.constant 0 : index
    %28 = vector.load %arg9[%c0_21, %c0_22] : memref<1x128xf32, #tpu.memory_space<vmem>>, vector<1x128xf32>
    %29 = vector.broadcast %28 : vector<1x128xf32> to vector<16x128xf32>
    %30 = arith.addf %27, %29 : vector<16x128xf32>
    %31 = tpu.iota {dimensions = array<i32: 1>} : vector<16x128xi32>
    %c2_i32 = arith.constant 2 : i32
    %32 = vector.broadcast %c2_i32 : i32 to vector<16x128xi32>
    %33 = arith.cmpi sge, %31, %32 : vector<16x128xi32>
    %c4_i32 = arith.constant 4 : i32
    %34 = vector.broadcast %c4_i32 : i32 to vector<16x128xi32>
    %35 = arith.cmpi slt, %31, %34 : vector<16x128xi32>
    %36 = arith.andi %33, %35 : vector<16x128xi1>
    %cst_23 = arith.constant -2.000000e+01 : f32
    %cst_24 = arith.constant 2.000000e+00 : f32
    %37 = vector.broadcast %cst_23 : f32 to vector<16x128xf32>
    %38 = arith.maximumf %37, %30 : vector<16x128xf32>
    %39 = vector.broadcast %cst_24 : f32 to vector<16x128xf32>
    %40 = arith.minimumf %39, %38 : vector<16x128xf32>
    %41 = arith.select %36, %40, %30 : vector<16x128xi1>, vector<16x128xf32>
    %c0_25 = arith.constant 0 : index
    %c0_26 = arith.constant 0 : index
    %42 = vector.load %arg10[%c0_25, %c0_26] : memref<16x128xf32, #tpu.memory_space<vmem>>, vector<16x128xf32>
    tpu.vector_store %arg10[%c0_25, %c0_26], %41 {strides = array<i32>} : memref<16x128xf32, #tpu.memory_space<vmem>>, vector<16x128xf32>,
    return
  }
  func.func @transform_0(%arg0: i32) -> (i32, i32) {
    %c0_i32 = arith.constant 0 : i32
    %c0_i32_0 = arith.constant 0 : i32
    return %arg0, %c0_i32 : i32, i32
  }
  func.func @transform_1(%arg0: i32) -> (i32, i32) {
    %c0_i32 = arith.constant 0 : i32
    %c0_i32_0 = arith.constant 0 : i32
    %c0_i32_1 = arith.constant 0 : i32
    return %c0_i32, %c0_i32_0 : i32, i32
  }
  func.func @transform_2(%arg0: i32) -> (i32, i32) {
    %c0_i32 = arith.constant 0 : i32
    %c0_i32_0 = arith.constant 0 : i32
    %c0_i32_1 = arith.constant 0 : i32
    return %c0_i32, %c0_i32_0 : i32, i32
  }
  func.func @transform_3(%arg0: i32) -> (i32, i32) {
    %c0_i32 = arith.constant 0 : i32
    %c0_i32_0 = arith.constant 0 : i32
    %c0_i32_1 = arith.constant 0 : i32
    return %c0_i32, %c0_i32_0 : i32, i32
  }
  func.func @transform_4(%arg0: i32) -> (i32, i32) {
    %c0_i32 = arith.constant 0 : i32
    %c0_i32_0 = arith.constant 0 : i32
    %c0_i32_1 = arith.constant 0 : i32
    return %c0_i32, %c0_i32_0 : i32, i32
  }
  func.func @transform_5(%arg0: i32) -> (i32, i32) {
    %c0_i32 = arith.constant 0 : i32
    %c0_i32_0 = arith.constant 0 : i32
    %c0_i32_1 = arith.constant 0 : i32
    return %c0_i32, %c0_i32_0 : i32, i32
  }
  func.func @transform_6(%arg0: i32) -> (i32, i32) {
    %c0_i32 = arith.constant 0 : i32
    %c0_i32_0 = arith.constant 0 : i32
    %c0_i32_1 = arith.constant 0 : i32
    return %c0_i32, %c0_i32_0 : i32, i32
  }
  func.func @transform_7(%arg0: i32) -> (i32, i32) {
    %c0_i32 = arith.constant 0 : i32
    %c0_i32_0 = arith.constant 0 : i32
    %c0_i32_1 = arith.constant 0 : i32
    return %c0_i32, %c0_i32_0 : i32, i32
  }
  func.func @transform_8(%arg0: i32) -> (i32, i32) {
    %c0_i32 = arith.constant 0 : i32
    %c0_i32_0 = arith.constant 0 : i32
    %c0_i32_1 = arith.constant 0 : i32
    return %c0_i32, %c0_i32_0 : i32, i32
  }
  func.func @transform_9(%arg0: i32) -> (i32, i32) {
    %c0_i32 = arith.constant 0 : i32
    %c0_i32_0 = arith.constant 0 : i32
    return %arg0, %c0_i32 : i32, i32
  }
}

</mosaic_0001>

<bundles_post_ra>
// kernel: policy_net_gaussian_forward.1
= control target key start
LH: loop header
LB: loop body
LE: loop exit
PB: predicated region body
PF: predicated region fallthrough
CT: control target
= control target key end

     0   :  { %14 = vsyncpa [#allocation3], 0  ;;  %s3707_s0 = inlined_call_operand.vmem [shape: f32[16,38], index: 0, kind: input, shape index: {}]   ;;  %s3708_s1 = inlined_call_operand.hbm [shape: bf16[38,512], index: 1, kind: input, shape index: {}]   ;;  %s3709_s2 = inlined_call_operand.vmem [shape: f32[1,512], index: 2, kind: input, shape index: {}]   ;;  %s3710_s3 = inlined_call_operand.hbm [shape: bf16[512,512], index: 3, kind: input, shape index: {}]   ;;  %s3711_s4 = inlined_call_operand.vmem [shape: f32[1,512], index: 4, kind: input, shape index: {}]   ;;  %s3712_s5 = inlined_call_operand.hbm [shape: bf16[512,512], index: 5, kind: input, shape index: {}]   ;;  %s3713_s6 = inlined_call_operand.vmem [shape: f32[1,512], index: 6, kind: input, shape index: {}]   ;;  %s3714_s7 = inlined_call_operand.hbm [shape: bf16[512,128], index: 7, kind: input, shape index: {}]   ;;  %s3715_s8 = inlined_call_operand.vmem [shape: f32[1,128], index: 8, kind: input, shape index: {}]   ;;  %s3716_s9 = inlined_call_operand.vmem [shape: f32[16,128], index: 9, kind: output, shape index: {}]  }
   0x1   :  { %15 = vsyncpa [#allocation5], 0 }
   0x2   :  { %16 = vsyncpa [#allocation8], 0  ;;  %s3517_s30 = smov [#allocation4]   ;;  %s3518_s11 = smov [#allocation2]  }
   0x3   :  { %s38_s10 = sshll.u32 %s3517_s30, 4  ;;  %s24_s12 = sshll.u32 %s3518_s11, 4  ;;  %s39_s10 = int_to_ptr.vmem [resolvable:$true] %s38_s10  ;;  %s3576_s12 = int_to_ptr.vmem [resolvable:$true] %s24_s12 }
   0x4   :  { %s3423_s15 = scalar_lea.hbm %s3710_s3, 16384 }
   0x5   :  { %p3424_p0 = scmp.ne.s32.totalorder %s3710_s3, %s3423_s15  ;;  %p3427_p1 = scmp.lt.u32.totalorder %s3423_s15, %s3710_s3 }
   0x7   :  { %p3429_p2 = pnand %p3427_p1, %p3424_p0 }
   0x9   :  { %3432 = shalt.err (!%p3429_p2)
}
   0xa   :  { %s3433_s20 = scalar_lea.vmem %s39_s10, 16384  ;;  %p3438_p4 = scmp.lt.s32.totalorder %s39_s10, %s39_s10 }
   0xb   :  { %p3434_p3 = scmp.ne.s32.totalorder %s39_s10, %s3433_s20  ;;  %p3439_p5 = scmp.lt.s32.totalorder %s3433_s20, %s3433_s20 }
   0xd   :  { %p3440_p6 = por %p3439_p5, %p3438_p4 }
   0xf   :  { %p3441_p7 = pnand %p3440_p6, %p3434_p3 }
  0x11   :  { %3444 = shalt.err (!%p3441_p7)
}
  0x12   :  { %s3519_s21 = smov 256   ;;  %s3520_s22 = smov 16  }
  0x13   :  { %44 = dma.hbm_to_vmem [thread:$0]  %s3710_s3, 16384, %s39_s10, [#allocation5], %s3519_s21, %s3519_s21, %s3520_s22  }
  0x14   :  { %s3445_s27 = scalar_lea.hbm %s3708_s1, 1280 }
  0x15   :  { %p3446_p8 = scmp.ne.s32.totalorder %s3708_s1, %s3445_s27  ;;  %p3449_p9 = scmp.lt.u32.totalorder %s3445_s27, %s3708_s1 }
  0x17   :  { %p3451_p10 = pnand %p3449_p9, %p3446_p8 }
  0x19   :  { %3454 = shalt.err (!%p3451_p10)
}
  0x1a   :  { %s3455_s13 = scalar_lea.vmem %s3576_s12, 1280  ;;  %p3460_p12 = scmp.lt.s32.totalorder %s3576_s12, %s3576_s12 }
  0x1b   :  { %p3456_p11 = scmp.ne.s32.totalorder %s3576_s12, %s3455_s13  ;;  %p3461_p13 = scmp.lt.s32.totalorder %s3455_s13, %s3455_s13 }
  0x1d   :  { %p3462_p0 = por %p3461_p13, %p3460_p12 }
  0x1f   :  { %p3463_p1 = pnand %p3462_p0, %p3456_p11 }
  0x21   :  { %3466 = shalt.err (!%p3463_p1)
}
  0x22   :  { %30 = dma.hbm_to_vmem [thread:$0]  %s3708_s1, 1280, %s3576_s12, [#allocation3], %s3519_s21, %s3519_s21, %s3520_s22  }
  0x23   :  { %s3521_s14 = smov [#allocation6]   ;;  %s3522_s16 = smov [#allocation7]  }
  0x24   :  { %s52_s15 = sshll.u32 %s3521_s14, 4  ;;  %s66_s17 = sshll.u32 %s3522_s16, 4  ;;  %s53_s15 = int_to_ptr.vmem [resolvable:$true] %s52_s15  ;;  %s3613_s17 = int_to_ptr.vmem [resolvable:$true] %s66_s17 }
  0x25   :  { %s3467_s20 = scalar_lea.hbm %s3712_s5, 16384 }
  0x26   :  { %p3468_p2 = scmp.ne.s32.totalorder %s3712_s5, %s3467_s20  ;;  %p3471_p3 = scmp.lt.u32.totalorder %s3467_s20, %s3712_s5 }
  0x28   :  { %p3473_p4 = pnand %p3471_p3, %p3468_p2 }
  0x2a   :  { %3476 = shalt.err (!%p3473_p4)
}
  0x2b   :  { %s3477_s1 = scalar_lea.vmem %s53_s15, 16384  ;;  %p3482_p6 = scmp.lt.s32.totalorder %s53_s15, %s53_s15 }
  0x2c   :  { %p3478_p5 = scmp.ne.s32.totalorder %s53_s15, %s3477_s1  ;;  %p3483_p7 = scmp.lt.s32.totalorder %s3477_s1, %s3477_s1 }
  0x2e   :  { %p3484_p8 = por %p3483_p7, %p3482_p6 }
  0x30   :  { %p3485_p9 = pnand %p3484_p8, %p3478_p5 }
  0x32   :  { %3488 = shalt.err (!%p3485_p9)
}
  0x33   :  { %58 = dma.hbm_to_vmem [thread:$0]  %s3712_s5, 16384, %s53_s15, [#allocation5], %s3519_s21, %s3519_s21, %s3520_s22  }
  0x34   :  { %s3489_s30 = scalar_lea.hbm %s3714_s7, 4096 }
  0x35   :  { %p3490_p10 = scmp.ne.s32.totalorder %s3714_s7, %s3489_s30  ;;  %p3493_p11 = scmp.lt.u32.totalorder %s3489_s30, %s3714_s7 }
  0x37   :  { %p3495_p12 = pnand %p3493_p11, %p3490_p10 }
  0x39   :  { %3498 = shalt.err (!%p3495_p12)
}
  0x3a   :  { %s3499_s14 = scalar_lea.vmem %s3613_s17, 4096  ;;  %p3504_p0 = scmp.lt.s32.totalorder %s3613_s17, %s3613_s17 }
  0x3b   :  { %p3500_p13 = scmp.ne.s32.totalorder %s3613_s17, %s3499_s14  ;;  %p3505_p1 = scmp.lt.s32.totalorder %s3499_s14, %s3499_s14 }
  0x3d   :  { %p3506_p2 = por %p3505_p1, %p3504_p0 }
  0x3f   :  { %p3507_p3 = pnand %p3506_p2, %p3500_p13 }
  0x41   :  { %3510 = shalt.err (!%p3507_p3)
}
  0x42   :  { %s3523_s5 = smov 64   ;;  %s3524_s21 = smov 4  }
  0x43   :  { %72 = dma.hbm_to_vmem [thread:$0]  %s3714_s7, 4096, %s3613_s17, [#allocation8], %s3523_s5, %s3523_s5, %s3524_s21  }
  0x44   :  { %3511 = dma.done.wait [#allocation3], 1280  }
  0x45   :  { %3512 = vsyncadd [#allocation3], 4294966016 }
  0x46   :  { %3513 = dma.done.wait [#allocation5], 32768  }
  0x47   :  { %3514 = vsyncadd [#allocation5], 4294934528 }
  0x48   :  { %3515 = dma.done.wait [#allocation8], 4096  }
  0x49   :  { %3516 = vsyncadd [#allocation8], 4294963200  ;;  %v3525_v0 = vmov 0   ;;  %v2991_v1 = vld [vmem:[#allocation2 + $0x4] ss:$16 sps:$4 sm:$0xff]   ;;  %vm177_vm0 = vcmask 1042432  }
  0x4a   :  { %222 = vmatprep.mubr.bf16.mxu0 %v3525_v0  ;;  %265 = vmatprep.mubr.bf16.mxu1 %v3525_v0  ;;  %v2993_v2 = vld [vmem:[#allocation2] ss:$16 sps:$4 sm:$0xff]   ;;  %v2994_v3 = vld [vmem:[#allocation2 + $0x24] ss:$16 sps:$4 sm:$0xff]   ;;  %v2999_v8 = vld [vmem:[#allocation2 + $0xc] ss:$16 sps:$4 sm:$0xff]  }
  0x4b   :  { %190 = vmatprep.subr.bf16.mxu0 %v2991_v1  ;;  %v99_v4 = vld [vmem:[#allocation2 + $0x40] sm:$0x77]  ;;  %v3001_v9 = vld [vmem:[#allocation2 + $0x8] ss:$16 sps:$4 sm:$0xff]   ;;  %v3002_v10 = vld [vmem:[#allocation2 + $0x2c] ss:$16 sps:$4 sm:$0xff]   ;;  %233 = vmatprep.subr.bf16.mxu1 %v2999_v8 }
  0x4c   :  { %191 = vmatpush1.bf16.msra.mxu0 %v2993_v2  ;;  %v2996_v5 = vld [vmem:[#allocation2 + $0x20] ss:$16 sps:$4 sm:$0xff]   ;;  %v2610_v6 = vcombine.high %v99_v4, %v99_v4  ;;  %v2609_v7 = vcombine.low %v99_v4, %v99_v4  ;;  %v88_v11 = vld [vmem:[%s3707_s0] sm:$0xff]  ;;  %234 = vmatpush1.bf16.msra.mxu1 %v3001_v9  ;;  %v3009_v18 = vld [vmem:[#allocation4 + $0x4] ss:$16 sps:$4 sm:$0xff]   ;;  %vm173_vm1 = vcmask 310272  }
  0x4d   :  { %192 = vmatprep.subr.bf16.mxu0 %v2994_v3  ;;  %v100_v12 = vld [vmem:[#allocation2 + $0x48] sm:$0x77]  ;;  %v89_v13 = vld [vmem:[%s3707_s0 + $0x8] sm:$0xff]  ;;  %235 = vmatprep.subr.bf16.mxu1 %v3002_v10 }
  0x4e   :  { %v3004_v14 = vld [vmem:[#allocation2 + $0x28] ss:$16 sps:$4 sm:$0xff]   ;;  %v179_v15 = vsel %vm177_vm0, %v2609_v7, 0  ;;  %v2612_v16 = vcombine.high %v100_v12, %v100_v12  ;;  %v2611_v17 = vcombine.low %v100_v12, %v100_v12  ;;  %v90_v19 = vpack.c.bf16 %v89_v13, %v88_v11  ;;  %v3007_v20 = vld [vmem:[#allocation4] ss:$16 sps:$4 sm:$0xff]  }
  0x4f   :  { %v3012_v21 = vld [vmem:[#allocation4 + $0xc] ss:$16 sps:$4 sm:$0xff]   ;;  %v3015_v23 = vld [vmem:[#allocation4 + $0x24] ss:$16 sps:$4 sm:$0xff]   ;;  %v3010_v24 = vld [vmem:[#allocation4 + $0x8] ss:$16 sps:$4 sm:$0xff]  }
  0x50   :  { %193 = vmatpush1.bf16.msra.mxu0 %v2996_v5  ;;  %236 = vmatpush1.bf16.msra.mxu1 %v3004_v14  ;;  %v185_v22 = vsel %vm177_vm0, %v2611_v17, 0  ;;  %v3013_v25 = vld [vmem:[#allocation4 + $0x20] ss:$16 sps:$4 sm:$0xff]   ;;  %v3018_v26 = vld [vmem:[#allocation4 + $0x2c] ss:$16 sps:$4 sm:$0xff]  }
  0x51   :  { %2613 = vmatprep.subr.msk.bf16.mxu0 %vm177_vm0, %v2610_v6  ;;  %2615 = vmatprep.subr.msk.bf16.mxu1 %vm177_vm0, %v2612_v16  ;;  %v3021_v27 = vld [vmem:[#allocation4 + $0x44] ss:$16 sps:$4 sm:$0xff]   ;;  %v3016_v28 = vld [vmem:[#allocation4 + $0x28] ss:$16 sps:$4 sm:$0xff]   ;;  %v3019_v29 = vld [vmem:[#allocation4 + $0x40] ss:$16 sps:$4 sm:$0xff]  }
  0x52   :  { %v3024_v30 = vld [vmem:[#allocation4 + $0x4c] ss:$16 sps:$4 sm:$0xff]   ;;  %v3027_v31 = vld [vmem:[#allocation4 + $0x64] ss:$16 sps:$4 sm:$0xff]   ;;  %v3022_v32 = vld [vmem:[#allocation4 + $0x48] ss:$16 sps:$4 sm:$0xff]  }
  0x53   :  { %v3025_v33 = vld [vmem:[#allocation4 + $0x60] ss:$16 sps:$4 sm:$0xff]   ;;  %v3030_v34 = vld [vmem:[#allocation4 + $0x6c] ss:$16 sps:$4 sm:$0xff]   ;;  %v3033_v35 = vld [vmem:[#allocation4 + $0x84] ss:$16 sps:$4 sm:$0xff]  }
  0x54   :  { %195 = vmatpush1.bf16.msra.mxu0 %v179_v15  ;;  %238 = vmatpush1.bf16.msra.mxu1 %v185_v22  ;;  %v3028_v36 = vld [vmem:[#allocation4 + $0x68] ss:$16 sps:$4 sm:$0xff]   ;;  %v3031_v37 = vld [vmem:[#allocation4 + $0x80] ss:$16 sps:$4 sm:$0xff]   ;;  %v3036_v38 = vld [vmem:[#allocation4 + $0x8c] ss:$16 sps:$4 sm:$0xff]   ;;  %v103_v22 = vlaneseq }
  0x55   :  { %1078 = vmatprep.subr.bf16.mxu0 %v3009_v18  ;;  %1164 = vmatprep.subr.bf16.mxu1 %v3012_v21  ;;  %v3039_v39 = vld [vmem:[#allocation4 + $0xa4] ss:$16 sps:$4 sm:$0xff]   ;;  %v3034_v40 = vld [vmem:[#allocation4 + $0x88] ss:$16 sps:$4 sm:$0xff]   ;;  %v3037_v41 = vld [vmem:[#allocation4 + $0xa0] ss:$16 sps:$4 sm:$0xff]  }
  0x56   :  { %v3042_v42 = vld [vmem:[#allocation4 + $0xac] ss:$16 sps:$4 sm:$0xff]   ;;  %v3045_v43 = vld [vmem:[#allocation4 + $0xc4] ss:$16 sps:$4 sm:$0xff]   ;;  %v3040_v44 = vld [vmem:[#allocation4 + $0xa8] ss:$16 sps:$4 sm:$0xff]  }
  0x57   :  { %2614 = vmatmul.mubr.msk.bf16.vlgmr.msra.gmra.mrb[0].mxu0 %vm173_vm1, %v90_v19  ;;  %2616 = vmatmul.mubr.msk.bf16.vlgmr.msra.gmra.mrb[0].mxu1 %vm173_vm1, %v90_v19  ;;  %v3043_v45 = vld [vmem:[#allocation4 + $0xc0] ss:$16 sps:$4 sm:$0xff]   ;;  %v3048_v46 = vld [vmem:[#allocation4 + $0xcc] ss:$16 sps:$4 sm:$0xff]   ;;  %v3051_v47 = vld [vmem:[#allocation4 + $0xe4] ss:$16 sps:$4 sm:$0xff]  }
  0x58   :  { %1079 = vmatpush1.bf16.msra.mxu0 %v3007_v20  ;;  %1165 = vmatpush1.bf16.msra.mxu1 %v3010_v24  ;;  %v3046_v48 = vld [vmem:[#allocation4 + $0xc8] ss:$16 sps:$4 sm:$0xff]   ;;  %v3049_v49 = vld [vmem:[#allocation4 + $0xe0] ss:$16 sps:$4 sm:$0xff]   ;;  %v3054_v50 = vld [vmem:[#allocation4 + $0xec] ss:$16 sps:$4 sm:$0xff]  }
  0x59   :  { %1080 = vmatprep.subr.bf16.mxu0 %v3015_v23  ;;  %1166 = vmatprep.subr.bf16.mxu1 %v3018_v26  ;;  %v3057_v51 = vld [vmem:[#allocation4 + $0x104] ss:$16 sps:$4 sm:$0xff]   ;;  %v3052_v52 = vld [vmem:[#allocation4 + $0xe8] ss:$16 sps:$4 sm:$0xff]   ;;  %v3055_v53 = vld [vmem:[#allocation4 + $0x100] ss:$16 sps:$4 sm:$0xff]  }
  0x5a   :  { %v3060_v54 = vld [vmem:[#allocation4 + $0x10c] ss:$16 sps:$4 sm:$0xff]   ;;  %v3063_v55 = vld [vmem:[#allocation4 + $0x124] ss:$16 sps:$4 sm:$0xff]   ;;  %v3058_v56 = vld [vmem:[#allocation4 + $0x108] ss:$16 sps:$4 sm:$0xff]  }
  0x5b   :  { %v3061_v57 = vld [vmem:[#allocation4 + $0x120] ss:$16 sps:$4 sm:$0xff]   ;;  %v3066_v58 = vld [vmem:[#allocation4 + $0x12c] ss:$16 sps:$4 sm:$0xff]   ;;  %v3069_v59 = vld [vmem:[#allocation4 + $0x144] ss:$16 sps:$4 sm:$0xff]  }
  0x5c   :  { %1081 = vmatpush1.bf16.msra.mxu0 %v3013_v25  ;;  %1167 = vmatpush1.bf16.msra.mxu1 %v3016_v28  ;;  %v3064_v60 = vld [vmem:[#allocation4 + $0x128] ss:$16 sps:$4 sm:$0xff]   ;;  %v3067_v61 = vld [vmem:[#allocation4 + $0x140] ss:$16 sps:$4 sm:$0xff]   ;;  %v3072_v62 = vld [vmem:[#allocation4 + $0x14c] ss:$16 sps:$4 sm:$0xff]  }
  0x5d   :  { %1082 = vmatprep.subr.bf16.mxu0 %v3021_v27  ;;  %1168 = vmatprep.subr.bf16.mxu1 %v3024_v30  ;;  %v3075_v63 = vld [vmem:[#allocation4 + $0x164] ss:$16 sps:$4 sm:$0xff]   ;;  %v3070_v0 = vld [vmem:[#allocation4 + $0x148] ss:$16 sps:$4 sm:$0xff]   ;;  %v3073_v1 = vld [vmem:[#allocation4 + $0x160] ss:$16 sps:$4 sm:$0xff]  }
  0x5e   :  { %v3078_v2 = vld [vmem:[#allocation4 + $0x16c] ss:$16 sps:$4 sm:$0xff]   ;;  %v3081_v3 = vld [vmem:[#allocation4 + $0x184] ss:$16 sps:$4 sm:$0xff]   ;;  %v3076_v4 = vld [vmem:[#allocation4 + $0x168] ss:$16 sps:$4 sm:$0xff]  }
  0x5f   :  { %v3079_v5 = vld [vmem:[#allocation4 + $0x180] ss:$16 sps:$4 sm:$0xff]   ;;  %v3084_v6 = vld [vmem:[#allocation4 + $0x18c] ss:$16 sps:$4 sm:$0xff]   ;;  %v3087_v7 = vld [vmem:[#allocation4 + $0x1a4] ss:$16 sps:$4 sm:$0xff]  }
  0x60   :  { %1083 = vmatpush1.bf16.msra.mxu0 %v3019_v29  ;;  %1169 = vmatpush1.bf16.msra.mxu1 %v3022_v32  ;;  %v3082_v8 = vld [vmem:[#allocation4 + $0x188] ss:$16 sps:$4 sm:$0xff]   ;;  %v3085_v9 = vld [vmem:[#allocation4 + $0x1a0] ss:$16 sps:$4 sm:$0xff]   ;;  %v3090_v10 = vld [vmem:[#allocation4 + $0x1ac] ss:$16 sps:$4 sm:$0xff]  }
  0x61   :  { %1084 = vmatprep.subr.bf16.mxu0 %v3027_v31  ;;  %1170 = vmatprep.subr.bf16.mxu1 %v3030_v34  ;;  %v3088_v11 = vld [vmem:[#allocation4 + $0x1a8] ss:$16 sps:$4 sm:$0xff]   ;;  %v3093_v12 = vld [vmem:[#allocation4 + $0x1c4] ss:$16 sps:$4 sm:$0xff]   ;;  %v3096_v13 = vld [vmem:[#allocation4 + $0x1cc] ss:$16 sps:$4 sm:$0xff]  }
  0x62   :  { %v3091_v14 = vld [vmem:[#allocation4 + $0x1c0] ss:$16 sps:$4 sm:$0xff]   ;;  %v3094_v15 = vld [vmem:[#allocation4 + $0x1c8] ss:$16 sps:$4 sm:$0xff]   ;;  %v3099_v16 = vld [vmem:[#allocation4 + $0x1e4] ss:$16 sps:$4 sm:$0xff]  }
  0x63   :  { %v3102_v17 = vld [vmem:[#allocation4 + $0x1ec] ss:$16 sps:$4 sm:$0xff]   ;;  %v3097_v18 = vld [vmem:[#allocation4 + $0x1e0] ss:$16 sps:$4 sm:$0xff]   ;;  %v3100_v19 = vld [vmem:[#allocation4 + $0x1e8] ss:$16 sps:$4 sm:$0xff]  }
  0x64   :  { %1085 = vmatpush1.bf16.msra.mxu0 %v3025_v33  ;;  %1171 = vmatpush1.bf16.msra.mxu1 %v3028_v36  ;;  %v3105_v20 = vld [vmem:[#allocation4 + $0x204] ss:$16 sps:$4 sm:$0xff]   ;;  %v3108_v21 = vld [vmem:[#allocation4 + $0x20c] ss:$16 sps:$4 sm:$0xff]   ;;  %v104_v23 = vshrl.u32 %v103_v22, 7 }
  0x65   :  { %1086 = vmatprep.subr.bf16.mxu0 %v3033_v35  ;;  %1172 = vmatprep.subr.bf16.mxu1 %v3036_v38  ;;  %v101_v25 = vld [vmem:[%s3709_s2] sm:$0xf] }
  0x66   :  { %v3660_v24 = vsub.s32 0, %v104_v23  ;;  %v3665_v26 = vsub.s32 1, %v104_v23  ;;  %v3668_v28 = vsub.s32 2, %v104_v23  ;;  %v3671_v30 = vsub.s32 3, %v104_v23  ;;  %v3142_v23 = vld [vmem:[#allocation4 + $0x2c8] ss:$16 sps:$4 sm:$0xff]  }
  0x68   :  { %1087 = vmatpush1.bf16.msra.mxu0 %v3031_v37  ;;  %1173 = vmatpush1.bf16.msra.mxu1 %v3034_v40  ;;  %v106_v27 = vrot.slane %v101_v25, %v3660_v24  ;;  %v110_v29 = vrot.slane %v101_v25, %v3665_v26  ;;  %v114_v34 = vrot.slane %v101_v25, %v3668_v28 }
  0x69   :  { %1088 = vmatprep.subr.bf16.mxu0 %v3039_v39  ;;  %1174 = vmatprep.subr.bf16.mxu1 %v3042_v42  ;;  %v118_v37 = vrot.slane %v101_v25, %v3671_v30  ;;  %v3147_v25 = vld [vmem:[#allocation4 + $0x2e4] ss:$16 sps:$4 sm:$0xff]  }
  0x6c   :  { %1089 = vmatpush1.bf16.msra.mxu0 %v3037_v41  ;;  %1175 = vmatpush1.bf16.msra.mxu1 %v3040_v44 }
  0x6d   :  { %1090 = vmatprep.subr.bf16.mxu0 %v3045_v43  ;;  %1176 = vmatprep.subr.bf16.mxu1 %v3048_v46 }
  0x70   :  { %1091 = vmatpush1.bf16.msra.mxu0 %v3043_v45  ;;  %1177 = vmatpush1.bf16.msra.mxu1 %v3046_v48 }
  0x71   :  { %1092 = vmatprep.subr.bf16.mxu0 %v3051_v47  ;;  %1178 = vmatprep.subr.bf16.mxu1 %v3054_v50 }
  0x74   :  { %1093 = vmatpush1.bf16.msra.mxu0 %v3049_v49  ;;  %1179 = vmatpush1.bf16.msra.mxu1 %v3052_v52 }
  0x75   :  { %1094 = vmatprep.subr.bf16.mxu0 %v3057_v51  ;;  %1180 = vmatprep.subr.bf16.mxu1 %v3060_v54 }
  0x78   :  { %1095 = vmatpush1.bf16.msra.mxu0 %v3055_v53  ;;  %1181 = vmatpush1.bf16.msra.mxu1 %v3058_v56  ;;  %v3106_v56 = vld [vmem:[#allocation4 + $0x208] ss:$16 sps:$4 sm:$0xff]  }
  0x79   :  { %1096 = vmatprep.subr.bf16.mxu0 %v3063_v55  ;;  %1182 = vmatprep.subr.bf16.mxu1 %v3066_v58  ;;  %v3103_v55 = vld [vmem:[#allocation4 + $0x200] ss:$16 sps:$4 sm:$0xff]  }
  0x7c   :  { %1097 = vmatpush1.bf16.msra.mxu0 %v3061_v57  ;;  %1183 = vmatpush1.bf16.msra.mxu1 %v3064_v60  ;;  %v3114_v60 = vld [vmem:[#allocation4 + $0x22c] ss:$16 sps:$4 sm:$0xff]  }
  0x7d   :  { %1098 = vmatprep.subr.bf16.mxu0 %v3069_v59  ;;  %1184 = vmatprep.subr.bf16.mxu1 %v3072_v62  ;;  %v3111_v59 = vld [vmem:[#allocation4 + $0x224] ss:$16 sps:$4 sm:$0xff]  }
  0x80   :  { %1099 = vmatpush1.bf16.msra.mxu0 %v3067_v61  ;;  %1185 = vmatpush1.bf16.msra.mxu1 %v3070_v0  ;;  %v3109_v0 = vld [vmem:[#allocation4 + $0x220] ss:$16 sps:$4 sm:$0xff]  }
  0x81   :  { %1100 = vmatprep.subr.bf16.mxu0 %v3075_v63  ;;  %1186 = vmatprep.subr.bf16.mxu1 %v3078_v2 }
  0x84   :  { %1101 = vmatpush1.bf16.msra.mxu0 %v3073_v1  ;;  %1187 = vmatpush1.bf16.msra.mxu1 %v3076_v4  ;;  %v3112_v1 = vld [vmem:[#allocation4 + $0x228] ss:$16 sps:$4 sm:$0xff]   ;;  %v3120_v4 = vld [vmem:[#allocation4 + $0x24c] ss:$16 sps:$4 sm:$0xff]  }
  0x85   :  { %1102 = vmatprep.subr.bf16.mxu0 %v3081_v3  ;;  %1188 = vmatprep.subr.bf16.mxu1 %v3084_v6  ;;  %v3117_v3 = vld [vmem:[#allocation4 + $0x244] ss:$16 sps:$4 sm:$0xff]   ;;  %v3118_v6 = vld [vmem:[#allocation4 + $0x248] ss:$16 sps:$4 sm:$0xff]  }
  0x88   :  { %1103 = vmatpush1.bf16.msra.mxu0 %v3079_v5  ;;  %1189 = vmatpush1.bf16.msra.mxu1 %v3082_v8  ;;  %v3115_v5 = vld [vmem:[#allocation4 + $0x240] ss:$16 sps:$4 sm:$0xff]   ;;  %v3126_v8 = vld [vmem:[#allocation4 + $0x26c] ss:$16 sps:$4 sm:$0xff]  }
  0x89   :  { %1104 = vmatprep.subr.bf16.mxu0 %v3087_v7  ;;  %1190 = vmatprep.subr.bf16.mxu1 %v3090_v10  ;;  %v3123_v7 = vld [vmem:[#allocation4 + $0x264] ss:$16 sps:$4 sm:$0xff]   ;;  %v3124_v10 = vld [vmem:[#allocation4 + $0x268] ss:$16 sps:$4 sm:$0xff]  }
  0x8c   :  { %1105 = vmatpush1.bf16.msra.mxu0 %v3085_v9  ;;  %1191 = vmatpush1.bf16.msra.mxu1 %v3088_v11  ;;  %v3121_v9 = vld [vmem:[#allocation4 + $0x260] ss:$16 sps:$4 sm:$0xff]   ;;  %v3129_v11 = vld [vmem:[#allocation4 + $0x284] ss:$16 sps:$4 sm:$0xff]  }
  0x8d   :  { %1106 = vmatprep.subr.bf16.mxu0 %v3093_v12  ;;  %1192 = vmatprep.subr.bf16.mxu1 %v3096_v13  ;;  %v3132_v12 = vld [vmem:[#allocation4 + $0x28c] ss:$16 sps:$4 sm:$0xff]   ;;  %v3127_v13 = vld [vmem:[#allocation4 + $0x280] ss:$16 sps:$4 sm:$0xff]  }
  0x90   :  { %1107 = vmatpush1.bf16.msra.mxu0 %v3091_v14  ;;  %1193 = vmatpush1.bf16.msra.mxu1 %v3094_v15  ;;  %v3130_v14 = vld [vmem:[#allocation4 + $0x288] ss:$16 sps:$4 sm:$0xff]   ;;  %v3135_v15 = vld [vmem:[#allocation4 + $0x2a4] ss:$16 sps:$4 sm:$0xff]  }
  0x91   :  { %1108 = vmatprep.subr.bf16.mxu0 %v3099_v16  ;;  %1194 = vmatprep.subr.bf16.mxu1 %v3102_v17  ;;  %v3138_v16 = vld [vmem:[#allocation4 + $0x2ac] ss:$16 sps:$4 sm:$0xff]   ;;  %v3133_v17 = vld [vmem:[#allocation4 + $0x2a0] ss:$16 sps:$4 sm:$0xff]  }
  0x94   :  { %1109 = vmatpush1.bf16.msra.mxu0 %v3097_v18  ;;  %1195 = vmatpush1.bf16.msra.mxu1 %v3100_v19  ;;  %v3136_v18 = vld [vmem:[#allocation4 + $0x2a8] ss:$16 sps:$4 sm:$0xff]   ;;  %v3141_v19 = vld [vmem:[#allocation4 + $0x2c4] ss:$16 sps:$4 sm:$0xff]  }
  0x95   :  { %1121 = vmatprep.subr.bf16.mxu0 %v3105_v20  ;;  %1207 = vmatprep.subr.bf16.mxu1 %v3108_v21  ;;  %v3144_v20 = vld [vmem:[#allocation4 + $0x2cc] ss:$16 sps:$4 sm:$0xff]   ;;  %v3139_v21 = vld [vmem:[#allocation4 + $0x2c0] ss:$16 sps:$4 sm:$0xff]  }
 0x12a   :  { %v224_v31 = vpop.f32.mrb[0].mxu0  ;;  %v267_v41 = vpop.f32.mrb[0].mxu1 }
 0x12b   :  { %v225_v32 = vadd.f32 %v224_v31, %v106_v27  ;;  %v226_v33 = vpop.f32.mrb[1].mxu0  ;;  %v268_v44 = vadd.f32 %v267_v41, %v114_v34  ;;  %v269_v45 = vpop.f32.mrb[1].mxu1  ;;  %v3148_v31 = vld [vmem:[#allocation4 + $0x2e8] ss:$16 sps:$4 sm:$0xff]   ;;  %v3168_v41 = vld [vmem:[#allocation4 + $0x34c] ss:$16 sps:$4 sm:$0xff]  }
 0x12c   :  { %v227_v35 = vadd.f32 %v226_v33, %v110_v29  ;;  %v228_v36 = vpop.f32.mrb[2].mxu0  ;;  %v270_v48 = vadd.f32 %v269_v45, %v118_v37  ;;  %v271_v49 = vpop.f32.mrb[2].mxu1  ;;  %v3156_v33 = vld [vmem:[#allocation4 + $0x30c] ss:$16 sps:$4 sm:$0xff]  }
 0x12d   :  { %v229_v38 = vadd.f32 %v228_v36, %v106_v27  ;;  %v230_v39 = vpop.f32.mrb[3].mxu0  ;;  %v276_v42 = vmax.f32 %v225_v32, 0.0  ;;  %v278_v51 = vmax.f32 %v268_v44, 0.0  ;;  %v272_v52 = vadd.f32 %v271_v49, %v114_v34  ;;  %v273_v53 = vpop.f32.mrb[3].mxu1  ;;  %v3150_v27 = vld [vmem:[#allocation4 + $0x2ec] ss:$16 sps:$4 sm:$0xff]  }
 0x12e   :  { %v231_v40 = vadd.f32 %v230_v39, %v110_v29  ;;  %v277_v46 = vmax.f32 %v227_v35, 0.0  ;;  %v279_v57 = vmax.f32 %v270_v48, 0.0  ;;  %v274_v58 = vadd.f32 %v273_v53, %v118_v37  ;;  %v3145_v29 = vld [vmem:[#allocation4 + $0x2e0] ss:$16 sps:$4 sm:$0xff]   ;;  %v3153_v32 = vld [vmem:[#allocation4 + $0x304] ss:$16 sps:$4 sm:$0xff]  }
 0x12f   :  { %v280_v43 = vmax.f32 %v229_v38, 0.0  ;;  %v282_v61 = vmax.f32 %v272_v52, 0.0  ;;  %v3151_v34 = vld [vmem:[#allocation4 + $0x300] ss:$16 sps:$4 sm:$0xff]   ;;  %v3154_v35 = vld [vmem:[#allocation4 + $0x308] ss:$16 sps:$4 sm:$0xff]  }
 0x130   :  { %v281_v47 = vmax.f32 %v231_v40, 0.0  ;;  %v283_v62 = vmax.f32 %v274_v58, 0.0  ;;  %v3159_v36 = vld [vmem:[#allocation4 + $0x324] ss:$16 sps:$4 sm:$0xff]   ;;  %v3162_v37 = vld [vmem:[#allocation4 + $0x32c] ss:$16 sps:$4 sm:$0xff]  }
 0x131   :  { %v284_v50 = vpack.c.bf16 %v280_v43, %v276_v42  ;;  %v3675_v63 = vpack.c.bf16 %v282_v61, %v278_v51  ;;  %v3157_v38 = vld [vmem:[#allocation4 + $0x320] ss:$16 sps:$4 sm:$0xff]   ;;  %v3160_v39 = vld [vmem:[#allocation4 + $0x328] ss:$16 sps:$4 sm:$0xff]   ;;  %v3165_v40 = vld [vmem:[#allocation4 + $0x344] ss:$16 sps:$4 sm:$0xff]  }
 0x132   :  { %v285_v54 = vpack.c.bf16 %v281_v47, %v277_v46  ;;  %v287_v2 = vpack.c.bf16 %v283_v62, %v279_v57  ;;  %v3163_v42 = vld [vmem:[#allocation4 + $0x340] ss:$16 sps:$4 sm:$0xff]   ;;  %v3166_v43 = vld [vmem:[#allocation4 + $0x348] ss:$16 sps:$4 sm:$0xff]   ;;  %v3171_v44 = vld [vmem:[#allocation4 + $0x364] ss:$16 sps:$4 sm:$0xff]  }
 0x133   :  { %v3174_v45 = vld [vmem:[#allocation4 + $0x36c] ss:$16 sps:$4 sm:$0xff]   ;;  %v3169_v46 = vld [vmem:[#allocation4 + $0x360] ss:$16 sps:$4 sm:$0xff]   ;;  %v3172_v47 = vld [vmem:[#allocation4 + $0x368] ss:$16 sps:$4 sm:$0xff]  }
 0x134   :  { %1110 = vmatprep.mubr.bf16.mxu0 %v285_v54  ;;  %1196 = vmatprep.mubr.bf16.mxu1 %v285_v54  ;;  %v3177_v48 = vld [vmem:[#allocation4 + $0x384] ss:$16 sps:$4 sm:$0xff]   ;;  %v3180_v49 = vld [vmem:[#allocation4 + $0x38c] ss:$16 sps:$4 sm:$0xff]   ;;  %v3178_v51 = vld [vmem:[#allocation4 + $0x388] ss:$16 sps:$4 sm:$0xff]  }
 0x135   :  { %1111 = vmatmul.mubr.bf16.vlgmr.msra.gmra.mrb[4].mxu0 %v284_v50  ;;  %1197 = vmatmul.mubr.bf16.vlgmr.msra.gmra.mrb[4].mxu1 %v284_v50  ;;  %v3175_v50 = vld [vmem:[#allocation4 + $0x380] ss:$16 sps:$4 sm:$0xff]   ;;  %v3183_v52 = vld [vmem:[#allocation4 + $0x3a4] ss:$16 sps:$4 sm:$0xff]   ;;  %v3186_v53 = vld [vmem:[#allocation4 + $0x3ac] ss:$16 sps:$4 sm:$0xff]  }
 0x136   :  { %1122 = vmatpush1.bf16.msra.mxu0 %v3103_v55  ;;  %1208 = vmatpush1.bf16.msra.mxu1 %v3106_v56  ;;  %v3181_v54 = vld [vmem:[#allocation4 + $0x3a0] ss:$16 sps:$4 sm:$0xff]   ;;  %v3184_v55 = vld [vmem:[#allocation4 + $0x3a8] ss:$16 sps:$4 sm:$0xff]   ;;  %v3189_v56 = vld [vmem:[#allocation4 + $0x3c4] ss:$16 sps:$4 sm:$0xff]  }
 0x137   :  { %1123 = vmatprep.subr.bf16.mxu0 %v3111_v59  ;;  %1209 = vmatprep.subr.bf16.mxu1 %v3114_v60  ;;  %v3192_v57 = vld [vmem:[#allocation4 + $0x3cc] ss:$16 sps:$4 sm:$0xff]   ;;  %v3187_v58 = vld [vmem:[#allocation4 + $0x3c0] ss:$16 sps:$4 sm:$0xff]   ;;  %v3190_v59 = vld [vmem:[#allocation4 + $0x3c8] ss:$16 sps:$4 sm:$0xff]  }
 0x138   :  { %1153 = vmatprep.mubr.bf16.mxu0 %v287_v2  ;;  %1239 = vmatprep.mubr.bf16.mxu1 %v287_v2  ;;  %v3195_v60 = vld [vmem:[#allocation4 + $0x3e4] ss:$16 sps:$4 sm:$0xff]   ;;  %v3198_v61 = vld [vmem:[#allocation4 + $0x3ec] ss:$16 sps:$4 sm:$0xff]   ;;  %v3193_v62 = vld [vmem:[#allocation4 + $0x3e0] ss:$16 sps:$4 sm:$0xff]  }
 0x139   :  { %v3204_v2 = vld [vmem:[#allocation6 + $0xc] ss:$16 sps:$4 sm:$0xff]  }
 0x13a   :  { %1124 = vmatpush1.bf16.msra.mxu0 %v3109_v0  ;;  %1210 = vmatpush1.bf16.msra.mxu1 %v3112_v1  ;;  %v3196_v0 = vld [vmem:[#allocation4 + $0x3e8] ss:$16 sps:$4 sm:$0xff]   ;;  %v3201_v1 = vld [vmem:[#allocation6 + $0x4] ss:$16 sps:$4 sm:$0xff]  }
 0x13b   :  { %1125 = vmatprep.subr.bf16.mxu0 %v3117_v3  ;;  %1211 = vmatprep.subr.bf16.mxu1 %v3120_v4  ;;  %v3199_v3 = vld [vmem:[#allocation6] ss:$16 sps:$4 sm:$0xff]   ;;  %v3202_v4 = vld [vmem:[#allocation6 + $0x8] ss:$16 sps:$4 sm:$0xff]  }
 0x13e   :  { %1126 = vmatpush1.bf16.msra.mxu0 %v3115_v5  ;;  %1212 = vmatpush1.bf16.msra.mxu1 %v3118_v6  ;;  %v3207_v5 = vld [vmem:[#allocation6 + $0x24] ss:$16 sps:$4 sm:$0xff]   ;;  %v3210_v6 = vld [vmem:[#allocation6 + $0x2c] ss:$16 sps:$4 sm:$0xff]  }
 0x13f   :  { %1127 = vmatprep.subr.bf16.mxu0 %v3123_v7  ;;  %1213 = vmatprep.subr.bf16.mxu1 %v3126_v8  ;;  %v3205_v7 = vld [vmem:[#allocation6 + $0x20] ss:$16 sps:$4 sm:$0xff]   ;;  %v3208_v8 = vld [vmem:[#allocation6 + $0x28] ss:$16 sps:$4 sm:$0xff]  }
 0x142   :  { %1128 = vmatpush1.bf16.msra.mxu0 %v3121_v9  ;;  %1214 = vmatpush1.bf16.msra.mxu1 %v3124_v10  ;;  %v3213_v9 = vld [vmem:[#allocation6 + $0x44] ss:$16 sps:$4 sm:$0xff]   ;;  %v3216_v10 = vld [vmem:[#allocation6 + $0x4c] ss:$16 sps:$4 sm:$0xff]  }
 0x143   :  { %1129 = vmatprep.subr.bf16.mxu0 %v3129_v11  ;;  %1215 = vmatprep.subr.bf16.mxu1 %v3132_v12  ;;  %v3211_v11 = vld [vmem:[#allocation6 + $0x40] ss:$16 sps:$4 sm:$0xff]   ;;  %v3214_v12 = vld [vmem:[#allocation6 + $0x48] ss:$16 sps:$4 sm:$0xff]  }
 0x146   :  { %1130 = vmatpush1.bf16.msra.mxu0 %v3127_v13  ;;  %1216 = vmatpush1.bf16.msra.mxu1 %v3130_v14  ;;  %v3219_v13 = vld [vmem:[#allocation6 + $0x64] ss:$16 sps:$4 sm:$0xff]   ;;  %v3222_v14 = vld [vmem:[#allocation6 + $0x6c] ss:$16 sps:$4 sm:$0xff]  }
 0x147   :  { %1131 = vmatprep.subr.bf16.mxu0 %v3135_v15  ;;  %1217 = vmatprep.subr.bf16.mxu1 %v3138_v16  ;;  %v3217_v15 = vld [vmem:[#allocation6 + $0x60] ss:$16 sps:$4 sm:$0xff]   ;;  %v3225_v16 = vld [vmem:[#allocation6 + $0x84] ss:$16 sps:$4 sm:$0xff]  }
 0x14a   :  { %1132 = vmatpush1.bf16.msra.mxu0 %v3133_v17  ;;  %1218 = vmatpush1.bf16.msra.mxu1 %v3136_v18  ;;  %v3228_v17 = vld [vmem:[#allocation6 + $0x8c] ss:$16 sps:$4 sm:$0xff]   ;;  %v3223_v18 = vld [vmem:[#allocation6 + $0x80] ss:$16 sps:$4 sm:$0xff]  }
 0x14b   :  { %1133 = vmatprep.subr.bf16.mxu0 %v3141_v19  ;;  %1219 = vmatprep.subr.bf16.mxu1 %v3144_v20  ;;  %v3226_v19 = vld [vmem:[#allocation6 + $0x88] ss:$16 sps:$4 sm:$0xff]   ;;  %v3231_v20 = vld [vmem:[#allocation6 + $0xa4] ss:$16 sps:$4 sm:$0xff]  }
 0x14e   :  { %1134 = vmatpush1.bf16.msra.mxu0 %v3139_v21  ;;  %1220 = vmatpush1.bf16.msra.mxu1 %v3142_v23  ;;  %v3234_v21 = vld [vmem:[#allocation6 + $0xac] ss:$16 sps:$4 sm:$0xff]   ;;  %v3229_v23 = vld [vmem:[#allocation6 + $0xa0] ss:$16 sps:$4 sm:$0xff]  }
 0x14f   :  { %1135 = vmatprep.subr.bf16.mxu0 %v3147_v25  ;;  %1221 = vmatprep.subr.bf16.mxu1 %v3150_v27  ;;  %v3232_v25 = vld [vmem:[#allocation6 + $0xa8] ss:$16 sps:$4 sm:$0xff]   ;;  %v3237_v27 = vld [vmem:[#allocation6 + $0xc4] ss:$16 sps:$4 sm:$0xff]  }
 0x152   :  { %1136 = vmatpush1.bf16.msra.mxu0 %v3145_v29  ;;  %1222 = vmatpush1.bf16.msra.mxu1 %v3148_v31  ;;  %v3240_v29 = vld [vmem:[#allocation6 + $0xcc] ss:$16 sps:$4 sm:$0xff]   ;;  %v3235_v31 = vld [vmem:[#allocation6 + $0xc0] ss:$16 sps:$4 sm:$0xff]  }
 0x153   :  { %1137 = vmatprep.subr.bf16.mxu0 %v3153_v32  ;;  %1223 = vmatprep.subr.bf16.mxu1 %v3156_v33  ;;  %v3238_v32 = vld [vmem:[#allocation6 + $0xc8] ss:$16 sps:$4 sm:$0xff]   ;;  %v3243_v33 = vld [vmem:[#allocation6 + $0xe4] ss:$16 sps:$4 sm:$0xff]  }
 0x156   :  { %1138 = vmatpush1.bf16.msra.mxu0 %v3151_v34  ;;  %1224 = vmatpush1.bf16.msra.mxu1 %v3154_v35  ;;  %v3246_v34 = vld [vmem:[#allocation6 + $0xec] ss:$16 sps:$4 sm:$0xff]   ;;  %v3241_v35 = vld [vmem:[#allocation6 + $0xe0] ss:$16 sps:$4 sm:$0xff]  }
 0x157   :  { %1139 = vmatprep.subr.bf16.mxu0 %v3159_v36  ;;  %1225 = vmatprep.subr.bf16.mxu1 %v3162_v37  ;;  %v3244_v36 = vld [vmem:[#allocation6 + $0xe8] ss:$16 sps:$4 sm:$0xff]   ;;  %v3249_v37 = vld [vmem:[#allocation6 + $0x104] ss:$16 sps:$4 sm:$0xff]  }
 0x15a   :  { %1140 = vmatpush1.bf16.msra.mxu0 %v3157_v38  ;;  %1226 = vmatpush1.bf16.msra.mxu1 %v3160_v39  ;;  %v3252_v38 = vld [vmem:[#allocation6 + $0x10c] ss:$16 sps:$4 sm:$0xff]   ;;  %v3247_v39 = vld [vmem:[#allocation6 + $0x100] ss:$16 sps:$4 sm:$0xff]  }
 0x15b   :  { %1141 = vmatprep.subr.bf16.mxu0 %v3165_v40  ;;  %1227 = vmatprep.subr.bf16.mxu1 %v3168_v41  ;;  %v3250_v40 = vld [vmem:[#allocation6 + $0x108] ss:$16 sps:$4 sm:$0xff]   ;;  %v3255_v41 = vld [vmem:[#allocation6 + $0x124] ss:$16 sps:$4 sm:$0xff]  }
 0x15e   :  { %1142 = vmatpush1.bf16.msra.mxu0 %v3163_v42  ;;  %1228 = vmatpush1.bf16.msra.mxu1 %v3166_v43  ;;  %v3258_v42 = vld [vmem:[#allocation6 + $0x12c] ss:$16 sps:$4 sm:$0xff]   ;;  %v3253_v43 = vld [vmem:[#allocation6 + $0x120] ss:$16 sps:$4 sm:$0xff]  }
 0x15f   :  { %1143 = vmatprep.subr.bf16.mxu0 %v3171_v44  ;;  %1229 = vmatprep.subr.bf16.mxu1 %v3174_v45  ;;  %v3256_v44 = vld [vmem:[#allocation6 + $0x128] ss:$16 sps:$4 sm:$0xff]   ;;  %v3261_v45 = vld [vmem:[#allocation6 + $0x144] ss:$16 sps:$4 sm:$0xff]  }
 0x162   :  { %1144 = vmatpush1.bf16.msra.mxu0 %v3169_v46  ;;  %1230 = vmatpush1.bf16.msra.mxu1 %v3172_v47  ;;  %v3264_v46 = vld [vmem:[#allocation6 + $0x14c] ss:$16 sps:$4 sm:$0xff]   ;;  %v3259_v47 = vld [vmem:[#allocation6 + $0x140] ss:$16 sps:$4 sm:$0xff]  }
 0x163   :  { %1145 = vmatprep.subr.bf16.mxu0 %v3177_v48  ;;  %1231 = vmatprep.subr.bf16.mxu1 %v3180_v49  ;;  %v3262_v48 = vld [vmem:[#allocation6 + $0x148] ss:$16 sps:$4 sm:$0xff]   ;;  %v3267_v49 = vld [vmem:[#allocation6 + $0x164] ss:$16 sps:$4 sm:$0xff]  }
 0x166   :  { %1146 = vmatpush1.bf16.msra.mxu0 %v3175_v50  ;;  %1232 = vmatpush1.bf16.msra.mxu1 %v3178_v51  ;;  %v3270_v50 = vld [vmem:[#allocation6 + $0x16c] ss:$16 sps:$4 sm:$0xff]   ;;  %v3265_v51 = vld [vmem:[#allocation6 + $0x160] ss:$16 sps:$4 sm:$0xff]  }
 0x167   :  { %1147 = vmatprep.subr.bf16.mxu0 %v3183_v52  ;;  %1233 = vmatprep.subr.bf16.mxu1 %v3186_v53  ;;  %v3268_v52 = vld [vmem:[#allocation6 + $0x168] ss:$16 sps:$4 sm:$0xff]   ;;  %v3273_v53 = vld [vmem:[#allocation6 + $0x184] ss:$16 sps:$4 sm:$0xff]  }
 0x16a   :  { %1148 = vmatpush1.bf16.msra.mxu0 %v3181_v54  ;;  %1234 = vmatpush1.bf16.msra.mxu1 %v3184_v55  ;;  %v3276_v54 = vld [vmem:[#allocation6 + $0x18c] ss:$16 sps:$4 sm:$0xff]   ;;  %v3271_v55 = vld [vmem:[#allocation6 + $0x180] ss:$16 sps:$4 sm:$0xff]  }
 0x16b   :  { %1149 = vmatprep.subr.bf16.mxu0 %v3189_v56  ;;  %1235 = vmatprep.subr.bf16.mxu1 %v3192_v57  ;;  %v3274_v56 = vld [vmem:[#allocation6 + $0x188] ss:$16 sps:$4 sm:$0xff]   ;;  %v3279_v57 = vld [vmem:[#allocation6 + $0x1a4] ss:$16 sps:$4 sm:$0xff]  }
 0x16e   :  { %1150 = vmatpush1.bf16.msra.mxu0 %v3187_v58  ;;  %1236 = vmatpush1.bf16.msra.mxu1 %v3190_v59  ;;  %v3282_v58 = vld [vmem:[#allocation6 + $0x1ac] ss:$16 sps:$4 sm:$0xff]   ;;  %v3277_v59 = vld [vmem:[#allocation6 + $0x1a0] ss:$16 sps:$4 sm:$0xff]  }
 0x16f   :  { %1151 = vmatprep.subr.bf16.mxu0 %v3195_v60  ;;  %1237 = vmatprep.subr.bf16.mxu1 %v3198_v61  ;;  %v3280_v60 = vld [vmem:[#allocation6 + $0x1a8] ss:$16 sps:$4 sm:$0xff]   ;;  %v3285_v61 = vld [vmem:[#allocation6 + $0x1c4] ss:$16 sps:$4 sm:$0xff]  }
 0x172   :  { %1152 = vmatpush1.bf16.msra.mxu0 %v3193_v62  ;;  %1238 = vmatpush1.bf16.msra.mxu1 %v3196_v0  ;;  %v3288_v62 = vld [vmem:[#allocation6 + $0x1cc] ss:$16 sps:$4 sm:$0xff]   ;;  %v3283_v0 = vld [vmem:[#allocation6 + $0x1c0] ss:$16 sps:$4 sm:$0xff]  }
 0x173   :  { %2052 = vmatprep.subr.bf16.mxu0 %v3201_v1  ;;  %2138 = vmatprep.subr.bf16.mxu1 %v3204_v2  ;;  %v3286_v1 = vld [vmem:[#allocation6 + $0x1c8] ss:$16 sps:$4 sm:$0xff]   ;;  %v3291_v2 = vld [vmem:[#allocation6 + $0x1e4] ss:$16 sps:$4 sm:$0xff]  }
 0x175   :  { %1154 = vmatmul.mubr.bf16.vlgmr.msra.gmra.mrb[4].mxu0 %v3675_v63  ;;  %1240 = vmatmul.mubr.bf16.vlgmr.msra.gmra.mrb[4].mxu1 %v3675_v63  ;;  %v3220_v63 = vld [vmem:[#allocation6 + $0x68] ss:$16 sps:$4 sm:$0xff]  }
 0x176   :  { %2053 = vmatpush1.bf16.msra.mxu0 %v3199_v3  ;;  %2139 = vmatpush1.bf16.msra.mxu1 %v3202_v4  ;;  %v3294_v3 = vld [vmem:[#allocation6 + $0x1ec] ss:$16 sps:$4 sm:$0xff]   ;;  %v3289_v4 = vld [vmem:[#allocation6 + $0x1e0] ss:$16 sps:$4 sm:$0xff]  }
 0x177   :  { %2054 = vmatprep.subr.bf16.mxu0 %v3207_v5  ;;  %2140 = vmatprep.subr.bf16.mxu1 %v3210_v6  ;;  %v3292_v5 = vld [vmem:[#allocation6 + $0x1e8] ss:$16 sps:$4 sm:$0xff]   ;;  %v3297_v6 = vld [vmem:[#allocation6 + $0x204] ss:$16 sps:$4 sm:$0xff]  }
 0x17a   :  { %2055 = vmatpush1.bf16.msra.mxu0 %v3205_v7  ;;  %2141 = vmatpush1.bf16.msra.mxu1 %v3208_v8  ;;  %v3300_v7 = vld [vmem:[#allocation6 + $0x20c] ss:$16 sps:$4 sm:$0xff]   ;;  %v416_v8 = vld [vmem:[%s3711_s4] sm:$0xf] }
 0x17b   :  { %2056 = vmatprep.subr.bf16.mxu0 %v3213_v9  ;;  %2142 = vmatprep.subr.bf16.mxu1 %v3216_v10  ;;  %v421_v9 = vrot.slane %v416_v8, %v3660_v24  ;;  %v429_v10 = vrot.slane %v416_v8, %v3668_v28 }
 0x17e   :  { %2057 = vmatpush1.bf16.msra.mxu0 %v3211_v11  ;;  %2143 = vmatpush1.bf16.msra.mxu1 %v3214_v12  ;;  %v425_v11 = vrot.slane %v416_v8, %v3665_v26  ;;  %v433_v12 = vrot.slane %v416_v8, %v3671_v30  ;;  %v3339_v8 = vld [vmem:[#allocation6 + $0x2e4] ss:$16 sps:$4 sm:$0xff]  }
 0x17f   :  { %2058 = vmatprep.subr.bf16.mxu0 %v3219_v13  ;;  %2144 = vmatprep.subr.bf16.mxu1 %v3222_v14 }
 0x182   :  { %2059 = vmatpush1.bf16.msra.mxu0 %v3217_v15  ;;  %2145 = vmatpush1.bf16.msra.mxu1 %v3220_v63 }
 0x183   :  { %2060 = vmatprep.subr.bf16.mxu0 %v3225_v16  ;;  %2146 = vmatprep.subr.bf16.mxu1 %v3228_v17 }
 0x186   :  { %2061 = vmatpush1.bf16.msra.mxu0 %v3223_v18  ;;  %2147 = vmatpush1.bf16.msra.mxu1 %v3226_v19 }
 0x187   :  { %2062 = vmatprep.subr.bf16.mxu0 %v3231_v20  ;;  %2148 = vmatprep.subr.bf16.mxu1 %v3234_v21 }
 0x18a   :  { %2063 = vmatpush1.bf16.msra.mxu0 %v3229_v23  ;;  %2149 = vmatpush1.bf16.msra.mxu1 %v3232_v25 }
 0x18b   :  { %2064 = vmatprep.subr.bf16.mxu0 %v3237_v27  ;;  %2150 = vmatprep.subr.bf16.mxu1 %v3240_v29 }
 0x18e   :  { %2065 = vmatpush1.bf16.msra.mxu0 %v3235_v31  ;;  %2151 = vmatpush1.bf16.msra.mxu1 %v3238_v32 }
 0x18f   :  { %2066 = vmatprep.subr.bf16.mxu0 %v3243_v33  ;;  %2152 = vmatprep.subr.bf16.mxu1 %v3246_v34 }
 0x192   :  { %2067 = vmatpush1.bf16.msra.mxu0 %v3241_v35  ;;  %2153 = vmatpush1.bf16.msra.mxu1 %v3244_v36 }
 0x193   :  { %2068 = vmatprep.subr.bf16.mxu0 %v3249_v37  ;;  %2154 = vmatprep.subr.bf16.mxu1 %v3252_v38 }
 0x196   :  { %2069 = vmatpush1.bf16.msra.mxu0 %v3247_v39  ;;  %2155 = vmatpush1.bf16.msra.mxu1 %v3250_v40 }
 0x197   :  { %2070 = vmatprep.subr.bf16.mxu0 %v3255_v41  ;;  %2156 = vmatprep.subr.bf16.mxu1 %v3258_v42 }
 0x19a   :  { %2071 = vmatpush1.bf16.msra.mxu0 %v3253_v43  ;;  %2157 = vmatpush1.bf16.msra.mxu1 %v3256_v44 }
 0x19b   :  { %2072 = vmatprep.subr.bf16.mxu0 %v3261_v45  ;;  %2158 = vmatprep.subr.bf16.mxu1 %v3264_v46  ;;  %v3295_v45 = vld [vmem:[#allocation6 + $0x200] ss:$16 sps:$4 sm:$0xff]   ;;  %v3298_v46 = vld [vmem:[#allocation6 + $0x208] ss:$16 sps:$4 sm:$0xff]  }
 0x19e   :  { %2073 = vmatpush1.bf16.msra.mxu0 %v3259_v47  ;;  %2159 = vmatpush1.bf16.msra.mxu1 %v3262_v48  ;;  %v3303_v47 = vld [vmem:[#allocation6 + $0x224] ss:$16 sps:$4 sm:$0xff]   ;;  %v3306_v48 = vld [vmem:[#allocation6 + $0x22c] ss:$16 sps:$4 sm:$0xff]  }
 0x19f   :  { %2074 = vmatprep.subr.bf16.mxu0 %v3267_v49  ;;  %2160 = vmatprep.subr.bf16.mxu1 %v3270_v50  ;;  %v3301_v49 = vld [vmem:[#allocation6 + $0x220] ss:$16 sps:$4 sm:$0xff]   ;;  %v3304_v50 = vld [vmem:[#allocation6 + $0x228] ss:$16 sps:$4 sm:$0xff]  }
 0x1a2   :  { %2075 = vmatpush1.bf16.msra.mxu0 %v3265_v51  ;;  %2161 = vmatpush1.bf16.msra.mxu1 %v3268_v52  ;;  %v3309_v51 = vld [vmem:[#allocation6 + $0x244] ss:$16 sps:$4 sm:$0xff]   ;;  %v3312_v52 = vld [vmem:[#allocation6 + $0x24c] ss:$16 sps:$4 sm:$0xff]  }
 0x1a3   :  { %2076 = vmatprep.subr.bf16.mxu0 %v3273_v53  ;;  %2162 = vmatprep.subr.bf16.mxu1 %v3276_v54  ;;  %v3307_v53 = vld [vmem:[#allocation6 + $0x240] ss:$16 sps:$4 sm:$0xff]   ;;  %v3310_v54 = vld [vmem:[#allocation6 + $0x248] ss:$16 sps:$4 sm:$0xff]  }
 0x1a6   :  { %2077 = vmatpush1.bf16.msra.mxu0 %v3271_v55  ;;  %2163 = vmatpush1.bf16.msra.mxu1 %v3274_v56  ;;  %v3315_v55 = vld [vmem:[#allocation6 + $0x264] ss:$16 sps:$4 sm:$0xff]   ;;  %v3318_v56 = vld [vmem:[#allocation6 + $0x26c] ss:$16 sps:$4 sm:$0xff]  }
 0x1a7   :  { %2078 = vmatprep.subr.bf16.mxu0 %v3279_v57  ;;  %2164 = vmatprep.subr.bf16.mxu1 %v3282_v58  ;;  %v3313_v57 = vld [vmem:[#allocation6 + $0x260] ss:$16 sps:$4 sm:$0xff]   ;;  %v3316_v58 = vld [vmem:[#allocation6 + $0x268] ss:$16 sps:$4 sm:$0xff]  }
 0x1aa   :  { %2079 = vmatpush1.bf16.msra.mxu0 %v3277_v59  ;;  %2165 = vmatpush1.bf16.msra.mxu1 %v3280_v60  ;;  %v3321_v59 = vld [vmem:[#allocation6 + $0x284] ss:$16 sps:$4 sm:$0xff]   ;;  %v3324_v60 = vld [vmem:[#allocation6 + $0x28c] ss:$16 sps:$4 sm:$0xff]  }
 0x1ab   :  { %2080 = vmatprep.subr.bf16.mxu0 %v3285_v61  ;;  %2166 = vmatprep.subr.bf16.mxu1 %v3288_v62  ;;  %v3319_v61 = vld [vmem:[#allocation6 + $0x280] ss:$16 sps:$4 sm:$0xff]   ;;  %v3322_v62 = vld [vmem:[#allocation6 + $0x288] ss:$16 sps:$4 sm:$0xff]  }
 0x1ae   :  { %2081 = vmatpush1.bf16.msra.mxu0 %v3283_v0  ;;  %2167 = vmatpush1.bf16.msra.mxu1 %v3286_v1  ;;  %v3327_v0 = vld [vmem:[#allocation6 + $0x2a4] ss:$16 sps:$4 sm:$0xff]   ;;  %v3330_v1 = vld [vmem:[#allocation6 + $0x2ac] ss:$16 sps:$4 sm:$0xff]  }
 0x1af   :  { %2082 = vmatprep.subr.bf16.mxu0 %v3291_v2  ;;  %2168 = vmatprep.subr.bf16.mxu1 %v3294_v3  ;;  %v3325_v2 = vld [vmem:[#allocation6 + $0x2a0] ss:$16 sps:$4 sm:$0xff]   ;;  %v3328_v3 = vld [vmem:[#allocation6 + $0x2a8] ss:$16 sps:$4 sm:$0xff]  }
 0x1b2   :  { %2083 = vmatpush1.bf16.msra.mxu0 %v3289_v4  ;;  %2169 = vmatpush1.bf16.msra.mxu1 %v3292_v5  ;;  %v3333_v4 = vld [vmem:[#allocation6 + $0x2c4] ss:$16 sps:$4 sm:$0xff]   ;;  %v3336_v5 = vld [vmem:[#allocation6 + $0x2cc] ss:$16 sps:$4 sm:$0xff]  }
 0x1b3   :  { %2095 = vmatprep.subr.bf16.mxu0 %v3297_v6  ;;  %2181 = vmatprep.subr.bf16.mxu1 %v3300_v7  ;;  %v3331_v6 = vld [vmem:[#allocation6 + $0x2c0] ss:$16 sps:$4 sm:$0xff]   ;;  %v3334_v7 = vld [vmem:[#allocation6 + $0x2c8] ss:$16 sps:$4 sm:$0xff]  }
 0x248   :  { %v1155_v13 = vpop.f32.mrb[4].mxu0  ;;  %v1241_v14 = vpop.f32.mrb[4].mxu1 }
 0x249   :  { %v2950_v15 = vadd.f32 %v1155_v13, %v421_v9  ;;  %v2954_v63 = vadd.f32 %v1241_v14, %v429_v10  ;;  %v1157_v16 = vpop.f32.mrb[5].mxu0  ;;  %v1243_v17 = vpop.f32.mrb[5].mxu1  ;;  %v3348_v13 = vld [vmem:[#allocation6 + $0x30c] ss:$16 sps:$4 sm:$0xff]   ;;  %v3343_v14 = vld [vmem:[#allocation6 + $0x300] ss:$16 sps:$4 sm:$0xff]  }
 0x24a   :  { %v2951_v18 = vadd.f32 %v1157_v16, %v425_v11  ;;  %v2955_v19 = vadd.f32 %v1243_v17, %v433_v12  ;;  %v1159_v20 = vpop.f32.mrb[6].mxu0  ;;  %v1245_v21 = vpop.f32.mrb[6].mxu1  ;;  %v3354_v16 = vld [vmem:[#allocation6 + $0x32c] ss:$16 sps:$4 sm:$0xff]   ;;  %v3349_v17 = vld [vmem:[#allocation6 + $0x320] ss:$16 sps:$4 sm:$0xff]  }
 0x24b   :  { %v2952_v23 = vadd.f32 %v1159_v20, %v421_v9  ;;  %v2956_v25 = vadd.f32 %v1245_v21, %v429_v10  ;;  %v1161_v27 = vpop.f32.mrb[7].mxu0  ;;  %v1247_v29 = vpop.f32.mrb[7].mxu1  ;;  %v1250_v33 = vmax.f32 %v2950_v15, 0.0  ;;  %v1252_v34 = vmax.f32 %v2954_v63, 0.0  ;;  %v3342_v9 = vld [vmem:[#allocation6 + $0x2ec] ss:$16 sps:$4 sm:$0xff]  }
 0x24c   :  { %v2953_v31 = vadd.f32 %v1161_v27, %v425_v11  ;;  %v2957_v32 = vadd.f32 %v1247_v29, %v433_v12  ;;  %v1251_v37 = vmax.f32 %v2951_v18, 0.0  ;;  %v1253_v38 = vmax.f32 %v2955_v19, 0.0  ;;  %v3337_v10 = vld [vmem:[#allocation6 + $0x2e0] ss:$16 sps:$4 sm:$0xff]   ;;  %v3340_v11 = vld [vmem:[#allocation6 + $0x2e8] ss:$16 sps:$4 sm:$0xff]  }
 0x24d   :  { %v1254_v35 = vmax.f32 %v2952_v23, 0.0  ;;  %v1256_v36 = vmax.f32 %v2956_v25, 0.0  ;;  %v3345_v12 = vld [vmem:[#allocation6 + $0x304] ss:$16 sps:$4 sm:$0xff]   ;;  %v3346_v15 = vld [vmem:[#allocation6 + $0x308] ss:$16 sps:$4 sm:$0xff]  }
 0x24e   :  { %v1255_v39 = vmax.f32 %v2953_v31, 0.0  ;;  %v1257_v40 = vmax.f32 %v2957_v32, 0.0  ;;  %v3351_v63 = vld [vmem:[#allocation6 + $0x324] ss:$16 sps:$4 sm:$0xff]   ;;  %v3352_v18 = vld [vmem:[#allocation6 + $0x328] ss:$16 sps:$4 sm:$0xff]  }
 0x24f   :  { %v1258_v41 = vpack.c.bf16 %v1254_v35, %v1250_v33  ;;  %v3686_v42 = vpack.c.bf16 %v1256_v36, %v1252_v34  ;;  %v3357_v19 = vld [vmem:[#allocation6 + $0x344] ss:$16 sps:$4 sm:$0xff]   ;;  %v3360_v20 = vld [vmem:[#allocation6 + $0x34c] ss:$16 sps:$4 sm:$0xff]   ;;  %v3355_v21 = vld [vmem:[#allocation6 + $0x340] ss:$16 sps:$4 sm:$0xff]  }
 0x250   :  { %v1259_v43 = vpack.c.bf16 %v1255_v39, %v1251_v37  ;;  %v1261_v44 = vpack.c.bf16 %v1257_v40, %v1253_v38  ;;  %v3358_v23 = vld [vmem:[#allocation6 + $0x348] ss:$16 sps:$4 sm:$0xff]   ;;  %v3363_v25 = vld [vmem:[#allocation6 + $0x364] ss:$16 sps:$4 sm:$0xff]   ;;  %v3366_v27 = vld [vmem:[#allocation6 + $0x36c] ss:$16 sps:$4 sm:$0xff]  }
 0x251   :  { %v3361_v29 = vld [vmem:[#allocation6 + $0x360] ss:$16 sps:$4 sm:$0xff]   ;;  %v3364_v31 = vld [vmem:[#allocation6 + $0x368] ss:$16 sps:$4 sm:$0xff]   ;;  %v3369_v32 = vld [vmem:[#allocation6 + $0x384] ss:$16 sps:$4 sm:$0xff]  }
 0x252   :  { %2084 = vmatprep.mubr.bf16.mxu0 %v1259_v43  ;;  %2170 = vmatprep.mubr.bf16.mxu1 %v1259_v43  ;;  %v3372_v33 = vld [vmem:[#allocation6 + $0x38c] ss:$16 sps:$4 sm:$0xff]   ;;  %v3367_v34 = vld [vmem:[#allocation6 + $0x380] ss:$16 sps:$4 sm:$0xff]   ;;  %v3370_v35 = vld [vmem:[#allocation6 + $0x388] ss:$16 sps:$4 sm:$0xff]  }
 0x253   :  { %2085 = vmatmul.mubr.bf16.vlgmr.msra.gmra.mrb[8].mxu0 %v1258_v41  ;;  %2171 = vmatmul.mubr.bf16.vlgmr.msra.gmra.mrb[8].mxu1 %v1258_v41  ;;  %v3375_v36 = vld [vmem:[#allocation6 + $0x3a4] ss:$16 sps:$4 sm:$0xff]   ;;  %v3378_v37 = vld [vmem:[#allocation6 + $0x3ac] ss:$16 sps:$4 sm:$0xff]   ;;  %v3373_v38 = vld [vmem:[#allocation6 + $0x3a0] ss:$16 sps:$4 sm:$0xff]  }
 0x254   :  { %2096 = vmatpush1.bf16.msra.mxu0 %v3295_v45  ;;  %2182 = vmatpush1.bf16.msra.mxu1 %v3298_v46  ;;  %v3376_v39 = vld [vmem:[#allocation6 + $0x3a8] ss:$16 sps:$4 sm:$0xff]   ;;  %v3381_v40 = vld [vmem:[#allocation6 + $0x3c4] ss:$16 sps:$4 sm:$0xff]   ;;  %v3384_v41 = vld [vmem:[#allocation6 + $0x3cc] ss:$16 sps:$4 sm:$0xff]  }
 0x255   :  { %2127 = vmatprep.mubr.bf16.mxu0 %v1261_v44  ;;  %2213 = vmatprep.mubr.bf16.mxu1 %v1261_v44  ;;  %v3379_v43 = vld [vmem:[#allocation6 + $0x3c0] ss:$16 sps:$4 sm:$0xff]   ;;  %v3382_v44 = vld [vmem:[#allocation6 + $0x3c8] ss:$16 sps:$4 sm:$0xff]   ;;  %v3387_v45 = vld [vmem:[#allocation6 + $0x3e4] ss:$16 sps:$4 sm:$0xff]  }
 0x256   :  { %2097 = vmatprep.subr.bf16.mxu0 %v3303_v47  ;;  %2183 = vmatprep.subr.bf16.mxu1 %v3306_v48  ;;  %v3390_v46 = vld [vmem:[#allocation6 + $0x3ec] ss:$16 sps:$4 sm:$0xff]   ;;  %v3385_v47 = vld [vmem:[#allocation6 + $0x3e0] ss:$16 sps:$4 sm:$0xff]   ;;  %v3388_v48 = vld [vmem:[#allocation6 + $0x3e8] ss:$16 sps:$4 sm:$0xff]  }
 0x258   :  { %2098 = vmatpush1.bf16.msra.mxu0 %v3301_v49  ;;  %2184 = vmatpush1.bf16.msra.mxu1 %v3304_v50  ;;  %v3391_v49 = vld [vmem:[#allocation7 + $0x40] sm:$0xff]  }
 0x259   :  { %2099 = vmatprep.subr.bf16.mxu0 %v3309_v51  ;;  %2185 = vmatprep.subr.bf16.mxu1 %v3312_v52  ;;  %v3392_v50 = vld [vmem:[#allocation7 + $0xc0] sm:$0xff]  }
 0x25a   :  { %v3393_v51 = vld [vmem:[#allocation7] sm:$0xff]  }
 0x25b   :  { %v3394_v52 = vld [vmem:[#allocation7 + $0x80] sm:$0xff]  }
 0x25c   :  { %2100 = vmatpush1.bf16.msra.mxu0 %v3307_v53  ;;  %2186 = vmatpush1.bf16.msra.mxu1 %v3310_v54  ;;  %v3395_v53 = vld [vmem:[#allocation7 + $0x48] sm:$0xff]  }
 0x25d   :  { %2101 = vmatprep.subr.bf16.mxu0 %v3315_v55  ;;  %2187 = vmatprep.subr.bf16.mxu1 %v3318_v56  ;;  %v3396_v54 = vld [vmem:[#allocation7 + $0xc8] sm:$0xff]  }
 0x25e   :  { %v3397_v55 = vld [vmem:[#allocation7 + $0x8] sm:$0xff]  }
 0x25f   :  { %v3398_v56 = vld [vmem:[#allocation7 + $0x88] sm:$0xff]  }
 0x260   :  { %2102 = vmatpush1.bf16.msra.mxu0 %v3313_v57  ;;  %2188 = vmatpush1.bf16.msra.mxu1 %v3316_v58  ;;  %v3399_v57 = vld [vmem:[#allocation7 + $0x50] sm:$0xff]  }
 0x261   :  { %2103 = vmatprep.subr.bf16.mxu0 %v3321_v59  ;;  %2189 = vmatprep.subr.bf16.mxu1 %v3324_v60  ;;  %v3400_v58 = vld [vmem:[#allocation7 + $0xd0] sm:$0xff]  }
 0x262   :  { %v3401_v59 = vld [vmem:[#allocation7 + $0x10] sm:$0xff]  }
 0x263   :  { %v3402_v60 = vld [vmem:[#allocation7 + $0x90] sm:$0xff]  }
 0x264   :  { %2104 = vmatpush1.bf16.msra.mxu0 %v3319_v61  ;;  %2190 = vmatpush1.bf16.msra.mxu1 %v3322_v62  ;;  %v3403_v61 = vld [vmem:[#allocation7 + $0x58] sm:$0xff]  }
 0x265   :  { %2105 = vmatprep.subr.bf16.mxu0 %v3327_v0  ;;  %2191 = vmatprep.subr.bf16.mxu1 %v3330_v1  ;;  %v3404_v62 = vld [vmem:[#allocation7 + $0xd8] sm:$0xff]   ;;  %v3407_v1 = vld [vmem:[#allocation7 + $0x60] sm:$0xff]  }
 0x266   :  { %v3405_v0 = vld [vmem:[#allocation7 + $0x18] sm:$0xff]  }
 0x268   :  { %2106 = vmatpush1.bf16.msra.mxu0 %v3325_v2  ;;  %2192 = vmatpush1.bf16.msra.mxu1 %v3328_v3  ;;  %v3408_v2 = vld [vmem:[#allocation7 + $0xe0] sm:$0xff]  }
 0x269   :  { %2107 = vmatprep.subr.bf16.mxu0 %v3333_v4  ;;  %2193 = vmatprep.subr.bf16.mxu1 %v3336_v5  ;;  %v3409_v3 = vld [vmem:[#allocation7 + $0x20] sm:$0xff]   ;;  %v3411_v5 = vld [vmem:[#allocation7 + $0x68] sm:$0xff]  }
 0x26a   :  { %v3410_v4 = vld [vmem:[#allocation7 + $0xa0] sm:$0xff]  }
 0x26c   :  { %2108 = vmatpush1.bf16.msra.mxu0 %v3331_v6  ;;  %2194 = vmatpush1.bf16.msra.mxu1 %v3334_v7  ;;  %v3412_v6 = vld [vmem:[#allocation7 + $0xe8] sm:$0xff]  }
 0x26d   :  { %2109 = vmatprep.subr.bf16.mxu0 %v3339_v8  ;;  %2195 = vmatprep.subr.bf16.mxu1 %v3342_v9  ;;  %v3413_v7 = vld [vmem:[#allocation7 + $0x28] sm:$0xff]   ;;  %v3415_v9 = vld [vmem:[#allocation7 + $0x70] sm:$0xff]  }
 0x26e   :  { %v3414_v8 = vld [vmem:[#allocation7 + $0xa8] sm:$0xff]  }
 0x270   :  { %2110 = vmatpush1.bf16.msra.mxu0 %v3337_v10  ;;  %2196 = vmatpush1.bf16.msra.mxu1 %v3340_v11  ;;  %v3416_v10 = vld [vmem:[#allocation7 + $0xf0] sm:$0xff]  }
 0x271   :  { %2111 = vmatprep.subr.bf16.mxu0 %v3345_v12  ;;  %2197 = vmatprep.subr.bf16.mxu1 %v3348_v13  ;;  %v3417_v11 = vld [vmem:[#allocation7 + $0x30] sm:$0xff]   ;;  %v3419_v13 = vld [vmem:[#allocation7 + $0x78] sm:$0xff]  }
 0x272   :  { %v3418_v12 = vld [vmem:[#allocation7 + $0xb0] sm:$0xff]  }
 0x274   :  { %2112 = vmatpush1.bf16.msra.mxu0 %v3343_v14  ;;  %2198 = vmatpush1.bf16.msra.mxu1 %v3346_v15  ;;  %v3420_v14 = vld [vmem:[#allocation7 + $0xf8] sm:$0xff]  }
 0x275   :  { %2113 = vmatprep.subr.bf16.mxu0 %v3351_v63  ;;  %2199 = vmatprep.subr.bf16.mxu1 %v3354_v16  ;;  %v3421_v15 = vld [vmem:[#allocation7 + $0x38] sm:$0xff]  }
 0x276   :  { %v3422_v63 = vld [vmem:[#allocation7 + $0xb8] sm:$0xff]  }
 0x277   :  { %v1390_v16 = vld [vmem:[%s3713_s6] sm:$0xf] }
 0x278   :  { %2114 = vmatpush1.bf16.msra.mxu0 %v3349_v17  ;;  %2200 = vmatpush1.bf16.msra.mxu1 %v3352_v18  ;;  %v1395_v17 = vrot.slane %v1390_v16, %v3660_v24  ;;  %v1403_v18 = vrot.slane %v1390_v16, %v3668_v28 }
 0x279   :  { %2115 = vmatprep.subr.bf16.mxu0 %v3357_v19  ;;  %2201 = vmatprep.subr.bf16.mxu1 %v3360_v20  ;;  %v1399_v19 = vrot.slane %v1390_v16, %v3665_v26  ;;  %v1407_v20 = vrot.slane %v1390_v16, %v3671_v30 }
 0x27c   :  { %2116 = vmatpush1.bf16.msra.mxu0 %v3355_v21  ;;  %2202 = vmatpush1.bf16.msra.mxu1 %v3358_v23 }
 0x27d   :  { %2117 = vmatprep.subr.bf16.mxu0 %v3363_v25  ;;  %2203 = vmatprep.subr.bf16.mxu1 %v3366_v27 }
 0x280   :  { %2118 = vmatpush1.bf16.msra.mxu0 %v3361_v29  ;;  %2204 = vmatpush1.bf16.msra.mxu1 %v3364_v31 }
 0x281   :  { %2119 = vmatprep.subr.bf16.mxu0 %v3369_v32  ;;  %2205 = vmatprep.subr.bf16.mxu1 %v3372_v33 }
 0x284   :  { %2120 = vmatpush1.bf16.msra.mxu0 %v3367_v34  ;;  %2206 = vmatpush1.bf16.msra.mxu1 %v3370_v35 }
 0x285   :  { %2121 = vmatprep.subr.bf16.mxu0 %v3375_v36  ;;  %2207 = vmatprep.subr.bf16.mxu1 %v3378_v37 }
 0x288   :  { %2122 = vmatpush1.bf16.msra.mxu0 %v3373_v38  ;;  %2208 = vmatpush1.bf16.msra.mxu1 %v3376_v39 }
 0x289   :  { %2123 = vmatprep.subr.bf16.mxu0 %v3381_v40  ;;  %2209 = vmatprep.subr.bf16.mxu1 %v3384_v41 }
 0x28c   :  { %2124 = vmatpush1.bf16.msra.mxu0 %v3379_v43  ;;  %2210 = vmatpush1.bf16.msra.mxu1 %v3382_v44 }
 0x28d   :  { %2125 = vmatprep.subr.bf16.mxu0 %v3387_v45  ;;  %2211 = vmatprep.subr.bf16.mxu1 %v3390_v46 }
 0x290   :  { %2126 = vmatpush1.bf16.msra.mxu0 %v3385_v47  ;;  %2212 = vmatpush1.bf16.msra.mxu1 %v3388_v48 }
 0x291   :  { %2906 = vmatprep.subr.bf16.mxu0 %v3391_v49  ;;  %2928 = vmatprep.subr.bf16.mxu1 %v3392_v50 }
 0x293   :  { %2128 = vmatmul.mubr.bf16.vlgmr.msra.gmra.mrb[8].mxu0 %v3686_v42  ;;  %2214 = vmatmul.mubr.bf16.vlgmr.msra.gmra.mrb[8].mxu1 %v3686_v42  ;;  %v3406_v42 = vld [vmem:[#allocation7 + $0x98] sm:$0xff]  }
 0x294   :  { %2907 = vmatpush3.bf16.msra.mxu0 %v3393_v51  ;;  %2929 = vmatpush3.bf16.msra.mxu1 %v3394_v52 }
 0x295   :  { %2908 = vmatprep.subr.bf16.mxu0 %v3395_v53  ;;  %2930 = vmatprep.subr.bf16.mxu1 %v3396_v54  ;;  %v2873_v53 = vld [vmem:[%s3715_s8] ss:$0 sm:$0xff] }
 0x298   :  { %2909 = vmatpush3.bf16.msra.mxu0 %v3397_v55  ;;  %2931 = vmatpush3.bf16.msra.mxu1 %v3398_v56 }
 0x299   :  { %2910 = vmatprep.subr.bf16.mxu0 %v3399_v57  ;;  %2932 = vmatprep.subr.bf16.mxu1 %v3400_v58  ;;  %v2582_v58 = vand.u32 127, %v103_v22 }
 0x29b   :  { %vm2583_vm2 = vcmp.ge.s32.totalorder %v2582_v58, 2  ;;  %vm2584_vm3 = vcmp.lt.s32.totalorder %v2582_v58, 4 }
 0x29c   :  { %2911 = vmatpush3.bf16.msra.mxu0 %v3401_v59  ;;  %2933 = vmatpush3.bf16.msra.mxu1 %v3402_v60  ;;  %vm2585_vm4 = vmand %vm2583_vm2, %vm2584_vm3 }
 0x29d   :  { %2912 = vmatprep.subr.bf16.mxu0 %v3403_v61  ;;  %2934 = vmatprep.subr.bf16.mxu1 %v3404_v62 }
 0x2a0   :  { %2913 = vmatpush3.bf16.msra.mxu0 %v3405_v0  ;;  %2935 = vmatpush3.bf16.msra.mxu1 %v3406_v42 }
 0x2a1   :  { %2914 = vmatprep.subr.bf16.mxu0 %v3407_v1  ;;  %2936 = vmatprep.subr.bf16.mxu1 %v3408_v2 }
 0x2a4   :  { %2915 = vmatpush3.bf16.msra.mxu0 %v3409_v3  ;;  %2937 = vmatpush3.bf16.msra.mxu1 %v3410_v4 }
 0x2a5   :  { %2916 = vmatprep.subr.bf16.mxu0 %v3411_v5  ;;  %2938 = vmatprep.subr.bf16.mxu1 %v3412_v6 }
 0x2a8   :  { %2917 = vmatpush3.bf16.msra.mxu0 %v3413_v7  ;;  %2939 = vmatpush3.bf16.msra.mxu1 %v3414_v8 }
 0x2a9   :  { %2918 = vmatprep.subr.bf16.mxu0 %v3415_v9  ;;  %2940 = vmatprep.subr.bf16.mxu1 %v3416_v10 }
 0x2ac   :  { %2919 = vmatpush3.bf16.msra.mxu0 %v3417_v11  ;;  %2941 = vmatpush3.bf16.msra.mxu1 %v3418_v12 }
 0x2ad   :  { %2920 = vmatprep.subr.bf16.mxu0 %v3419_v13  ;;  %2942 = vmatprep.subr.bf16.mxu1 %v3420_v14 }
 0x2b0   :  { %2921 = vmatpush3.bf16.msra.mxu0 %v3421_v15  ;;  %2943 = vmatpush3.bf16.msra.mxu1 %v3422_v63 }
 0x366   :  { %v2129_v21 = vpop.f32.mrb[8].mxu0  ;;  %v2215_v23 = vpop.f32.mrb[8].mxu1 }
 0x367   :  { %v2958_v25 = vadd.f32 %v2129_v21, %v1395_v17  ;;  %v2962_v27 = vadd.f32 %v2215_v23, %v1403_v18  ;;  %v2131_v29 = vpop.f32.mrb[9].mxu0  ;;  %v2217_v31 = vpop.f32.mrb[9].mxu1 }
 0x368   :  { %v2959_v32 = vadd.f32 %v2131_v29, %v1399_v19  ;;  %v2963_v33 = vadd.f32 %v2217_v31, %v1407_v20  ;;  %v2133_v34 = vpop.f32.mrb[10].mxu0  ;;  %v2219_v35 = vpop.f32.mrb[10].mxu1 }
 0x369   :  { %v2960_v36 = vadd.f32 %v2133_v34, %v1395_v17  ;;  %v2964_v37 = vadd.f32 %v2219_v35, %v1403_v18  ;;  %v2135_v38 = vpop.f32.mrb[11].mxu0  ;;  %v2221_v24 = vpop.f32.mrb[11].mxu1  ;;  %v2224_v40 = vmax.f32 %v2958_v25, 0.0  ;;  %v2226_v26 = vmax.f32 %v2962_v27, 0.0 }
 0x36a   :  { %v2961_v39 = vadd.f32 %v2135_v38, %v1399_v19  ;;  %v2965_v28 = vadd.f32 %v2221_v24, %v1407_v20  ;;  %v2225_v43 = vmax.f32 %v2959_v32, 0.0  ;;  %v2227_v44 = vmax.f32 %v2963_v33, 0.0 }
 0x36b   :  { %v2228_v41 = vmax.f32 %v2960_v36, 0.0  ;;  %v2230_v30 = vmax.f32 %v2964_v37, 0.0 }
 0x36c   :  { %v2229_v45 = vmax.f32 %v2961_v39, 0.0  ;;  %v2231_v46 = vmax.f32 %v2965_v28, 0.0 }
 0x36d   :  { %v2232_v47 = vpack.c.bf16 %v2228_v41, %v2224_v40  ;;  %v2234_v48 = vpack.c.bf16 %v2230_v30, %v2226_v26 }
 0x36e   :  { %v2233_v49 = vpack.c.bf16 %v2229_v45, %v2225_v43  ;;  %v2235_v50 = vpack.c.bf16 %v2231_v46, %v2227_v44 }
 0x370   :  { %2531 = vmatprep.mubr.bf16.mxu0 %v2233_v49  ;;  %2572 = vmatprep.mubr.bf16.mxu1 %v2235_v50 }
 0x371   :  { %2532 = vmatmul.mubr.bf16.vlgmr.msra.gmra.mrb[12].mxu0 %v2232_v47  ;;  %2573 = vmatmul.mubr.bf16.vlgmr.msra.gmra.mrb[12].mxu1 %v2234_v48 }
 0x444   :  { %v2922_v51 = vpop.f32.mrb[12].mxu0  ;;  %v2944_v52 = vpop.f32.mrb[12].mxu1 }
 0x445   :  { %v2923_v54 = vpop.f32.mrb[13].mxu0  ;;  %v2945_v55 = vpop.f32.mrb[13].mxu1 }
 0x446   :  { %v2924_v56 = vadd.f32 %v2923_v54, %v2922_v51  ;;  %v2946_v57 = vadd.f32 %v2945_v55, %v2944_v52  ;;  %v2925_v59 = vpop.f32.mrb[14].mxu0  ;;  %v2947_v60 = vpop.f32.mrb[14].mxu1 }
 0x447   :  { %v2926_v61 = vpop.f32.mrb[15].mxu0  ;;  %v2948_v62 = vpop.f32.mrb[15].mxu1 }
 0x448   :  { %v2534_v0 = vadd.f32 %v2924_v56, %v2873_v53  ;;  %v2927_v42 = vadd.f32 %v2926_v61, %v2925_v59  ;;  %v2949_v1 = vadd.f32 %v2948_v62, %v2947_v60 }
 0x44a   :  { %v2575_v2 = vadd.f32 %v2946_v57, %v2534_v0  ;;  %v2537_v3 = vadd.f32 %v2927_v42, %v2873_v53 }
 0x44c   :  { %v2586_v4 = vmax.f32 %v2575_v2, -20.0  ;;  %v2578_v5 = vadd.f32 %v2949_v1, %v2537_v3 }
 0x44e   :  { %v2588_v6 = vmin.f32 %v2586_v4, 2.0  ;;  %v2587_v7 = vmax.f32 %v2578_v5, -20.0 }
 0x450   :  { %v2590_v8 = vsel %vm2585_vm4, %v2588_v6, %v2575_v2  ;;  %v2589_v9 = vmin.f32 %v2587_v7, 2.0 }
 0x451   :  { %2592 = vst [vmem:[%s3716_s9] sm:$0xff] %v2590_v8 }
 0x452   :  { %v2591_v22 = vsel %vm2585_vm4, %v2589_v9, %v2578_v5 }
 0x453   :  { %2593 = vst [vmem:[%s3716_s9 + $0x8] sm:$0xff] %v2591_v22 }
 0x454   :  { %2598 = vsyncpa [#allocation3], 1 }
 0x455   :  { %2599 = vsyncpa [#allocation5], 1 }
 0x456   :  { %2600 = vsyncpa [#allocation8], 1 }

</bundles_post_ra>
